<compile_context>
chip_gen: v6e
topology: v6e:2x2x1
jax: 0.10.0
libtpu: 0.0.40
codegen_flags: <defaults>
</compile_context>

<pallas_src>
import jax
import jax.numpy as jnp
from jax.experimental import pallas as pl
from jax.experimental.pallas import tpu as pltpu


# ----------------------------- synthetic ModelConfig -------------------------
CONFIG = dict(
    mpd_periods=(2, 3),
    mpd_sublayer_base_channels=4,
    mpd_num_sublayers=2,
    mpd_sublayer_kernel_size=5,
    mpd_sublayer_stride=3,
    mpd_sublayer_last_kernel_size=3,
    relu_slope=0.1,
)


# ----------------------------- static layer geometry -------------------------
def layer_geometry(H_in, params):
    """Static per-layer shapes for the fused stack.

    Activations live in a phase-split, zero-padded 2-D layout:
        row = bw * pr + j     (bw = folded batch row, j = phase-row)
        col = r * Cin + c     (r = phase in [0, S), c = channel)
    i.e. padded time position p = j*S + r.  Conv tap k at output step h reads
    row (bw*pr + h + k//S), column block (k % S) -> a contiguous slice.
    """
    metas, H = [], H_in
    for p in params:
        K, Cin, Cout = p["w"].shape
        S = int(p["stride"])
        pad = (K - 1) // 2
        H_out = (H + 2 * pad - K) // S + 1          # PyTorch floor formula
        qmax = (K - 1) // S                         # largest row offset of a tap
        # phase-rows per folded row: enough for every tap window AND every
        # written (left-padded) input position.
        pr = max(H_out + qmax, -(-(pad + H) // S))
        metas.append(dict(K=K, S=S, Cin=Cin, Cout=Cout, pad=pad,
                          H_in=H, H_out=H_out, qmax=qmax, pr=pr,
                          act=bool(p["act"])))
        H = H_out
    return metas


# ----------------------------- fused Pallas kernel ---------------------------
def make_mpd_kernel(descs, slope):
    """All period-discriminator stacks in ONE kernel invocation."""
    nP = len(descs)
    n_layers = sum(len(d["metas"]) for d in descs)

    def kernel(*refs):
        pos = 0
        x_refs = refs[pos:pos + nP];        pos += nP          # staged layer-0 inputs
        w_refs = refs[pos:pos + n_layers];  pos += n_layers    # (K*Cin, Cout) each
        b_refs = refs[pos:pos + n_layers];  pos += n_layers    # (1, Cout) each
        o_refs = refs[pos:pos + n_layers];  pos += n_layers    # (BW*pr, Cout) slabs
        s_refs = refs[pos:]                                    # VMEM staging buffers

        li = 0   # flat (period, layer) index into w/b/o refs
        si = 0   # flat scratch index
        for d_idx, d in enumerate(descs):
            BW, metas = d["BW"], d["metas"]
            L = len(metas)
            cur = x_refs[d_idx]
            for l, m in enumerate(metas):
                K, S, Cin, Cout = m["K"], m["S"], m["Cin"], m["Cout"]
                pr = m["pr"]
                M = BW * pr

                # -- im2col: K contiguous 2-D slices, lane-concatenated -> (M, K*Cin)
                cols = [cur[(k // S):(k // S) + M,
                            (k % S) * Cin:(k % S + 1) * Cin]
                        for k in range(K)]
                patches = cols[0] if K == 1 else jnp.concatenate(cols, axis=1)

                # -- ONE MXU matmul per layer, f32 accumulation, fused bias + act
                y = jnp.dot(patches, w_refs[li][...],
                            preferred_element_type=jnp.float32)
                y = y + b_refs[li][...]                  # (1, Cout) broadcast
                if m["act"]:
                    y = jnp.maximum(y, slope * y)        # LeakyReLU
                o_refs[li][...] = y                      # flat feature slab

                # -- stage next layer's phase-split, zero-padded input in VMEM
                if l + 1 < L:
                    nm = metas[l + 1]
                    a = s_refs[si]; si += 1
                    a[...] = jnp.zeros(a.shape, a.dtype)          # implicit zero pad
                    P2, S2, pr2 = nm["pad"], nm["S"], nm["pr"]
                    H_val, C = m["H_out"], Cout                   # valid rows per bw
                    if S2 == 1:
                        # contiguous block per folded row
                        for bw in range(BW):
                            a[bw * pr2 + P2: bw * pr2 + P2 + H_val, :] = \
                                y[bw * pr: bw * pr + H_val, :]
                    else:
                        # scatter into (phase-row, phase) cells; all-static stores
                        for bw in range(BW):
                            for h in range(H_val):
                                q2, r2 = divmod(h + P2, S2)
                                a[bw * pr2 + q2: bw * pr2 + q2 + 1,
                                  r2 * C:(r2 + 1) * C] = \
                                    y[bw * pr + h: bw * pr + h + 1, :]
                    cur = a
                li += 1

    return kernel


# ----------------------------- parameters ------------------------------------
def init_period_disc_params(key, config):
    """Deterministic synthetic init.  weight_norm is an init-time
    reparameterization; its effective weight is materialized directly here."""
    base = config["mpd_sublayer_base_channels"]
    n = config["mpd_num_sublayers"]
    ks = config["mpd_sublayer_kernel_size"]
    stride = config["mpd_sublayer_stride"]
    last_ks = config["mpd_sublayer_last_kernel_size"]
    channels = [1] + [base * 2 ** i for i in range(n + 1)]

    params = []
    for i in range(len(channels) - 1):
        is_last = (i + 2 == len(channels))
        cin, cout = channels[i], channels[i + 1]
        key, kw, kb = jax.random.split(key, 3)
        w = jax.random.normal(kw, (ks, cin, cout), jnp.float32) * 0.2
        b = jax.random.normal(kb, (1, cout), jnp.float32) * 0.05
        params.append(dict(w=w, b=b, stride=(stride if not is_last else 1), act=True))
    cin = channels[-1]
    key, kw, kb = jax.random.split(key, 3)
    w = jax.random.normal(kw, (last_ks, cin, 1), jnp.float32) * 0.2
    b = jax.random.normal(kb, (1, 1), jnp.float32) * 0.05
    params.append(dict(w=w, b=b, stride=1, act=False))
    return params, key


# ----------------------------- staging helpers --------------------------------
def _period_geometry(x_shape, period, params):
    B, T = x_shape
    Tp = T if T % period == 0 else T + (period - T % period)
    H0, W = Tp // period, period
    return layer_geometry(H0, params), B, W, B * W


def _stage_period_input(x, period, metas):
    """PyTorch folds (B, T) -> (B, 1, H0, period); fold the period into the
    batch and stage layer-0's input directly in the phase-split layout
    (one-time XLA-side glue on the raw input)."""
    B, T = x.shape
    if T % period != 0:
        x = jnp.pad(x, ((0, 0), (0, period - T % period)))
        T = x.shape[1]
    H0, W = T // period, period
    BW = B * W
    m0 = metas[0]
    xf = x.reshape(B, H0, W).transpose(0, 2, 1).reshape(BW, H0)
    Hp = m0["pr"] * m0["S"]
    xp = jnp.pad(xf, ((0, 0), (m0["pad"], max(0, Hp - H0 - m0["pad"]))))[:, :Hp]
    x0 = xp.reshape(BW * m0["pr"], m0["S"])
    x0 = jnp.pad(x0, ((0, m0["qmax"]), (0, 0)))      # zero margin rows
    return x0


# ----------------------------- forward pass ------------------------------------
def multi_period_discriminator_forward(x, all_params, config):
    slope = config["relu_slope"]
    periods = config["mpd_periods"]

    descs, x0s, w_in, b_in, out_shape, scratch_shapes = [], [], [], [], [], []
    for period, params in zip(periods, all_params):
        metas, B, W, BW = _period_geometry(x.shape, period, params)
        descs.append(dict(metas=metas, B=B, W=W, BW=BW))
        x0s.append(_stage_period_input(x, period, metas))
        for p, m in zip(params, metas):
            w_in.append(p["w"].reshape(-1, p["w"].shape[2]))     # (K*Cin, Cout)
            b_in.append(p["b"])                                  # (1, Cout)
            out_shape.append(jax.ShapeDtypeStruct((BW * m["pr"], m["Cout"]),
                                                  jnp.float32))
        for m in metas[1:]:
            scratch_shapes.append(
                pltpu.VMEM((BW * m["pr"] + m["qmax"], m["S"] * m["Cin"]),
                           jnp.float32))

    outs = pl.pallas_call(
        make_mpd_kernel(descs, slope),
        out_shape=tuple(out_shape),
        scratch_shapes=scratch_shapes,
    )(*x0s, *w_in, *b_in)

    predictions, intermediate = [], []
    oi = 0
    for d in descs:
        B, W, BW, metas = d["B"], d["W"], d["BW"], d["metas"]
        feats = []
        for m in metas:
            o = outs[oi]; oi += 1
            # drop junk phase-rows, back to PyTorch NCHW (B, C, H, period)
            f = o.reshape(BW, m["pr"], m["Cout"])[:, :m["H_out"], :]
            f = f.reshape(B, W, m["H_out"], m["Cout"]).transpose(0, 3, 2, 1)
            feats.append(f)
        predictions.append(feats[-1].reshape(B, -1))   # nn.Flatten of last conv
        intermediate.extend(feats)
    return predictions, intermediate


# ----------------------------- pure-JAX reference ----------------------------
def ref_period_disc(x, period, params, slope):
    B, T = x.shape
    if T % period != 0:
        x = jnp.pad(x, ((0, 0), (0, period - T % period)))
        T = x.shape[1]
    h = x.reshape(B, 1, T // period, period)
    feats = []
    for p in params:
        K = p["w"].shape[0]
        pad = (K - 1) // 2
        w = jnp.transpose(p["w"], (2, 1, 0))[:, :, :, None]   # -> OIHW
        h = jax.lax.conv_general_dilated(
            h, w, window_strides=(p["stride"], 1),
            padding=((pad, pad), (0, 0)),
            dimension_numbers=("NCHW", "OIHW", "NCHW"))
        h = h + p["b"][0].reshape(1, -1, 1, 1)
        if p["act"]:
            h = jnp.where(h >= 0, h, slope * h)
        feats.append(h)
    return feats[-1].reshape(B, -1), feats


# ----------------------------- main -------------------------------------------
if __name__ == "__main__":
    key = jax.random.PRNGKey(0)
    B, T = 2, 48
    key, kx = jax.random.split(key)
    x = jax.random.normal(kx, (B, T), dtype=jnp.float32)

    all_params = []
    for _ in CONFIG["mpd_periods"]:
        params, key = init_period_disc_params(key, CONFIG)
        all_params.append(params)

    preds, feats = multi_period_discriminator_forward(x, all_params, CONFIG)
    jax.block_until_ready(preds)
    jax.block_until_ready(feats)

    # correctness check against a pure-JAX (XLA conv) reference
    ref_preds, ref_feats = [], []
    for period, params in zip(CONFIG["mpd_periods"], all_params):
        rp, rf = ref_period_disc(x, period, params, CONFIG["relu_slope"])
        ref_preds.append(rp)
        ref_feats.extend(rf)
    for a, b in zip(preds, ref_preds):
        assert a.shape == b.shape and a.dtype == b.dtype
        assert jnp.allclose(a, b, rtol=1e-3, atol=1e-3)
    for a, b in zip(feats, ref_feats):
        assert a.shape == b.shape and a.dtype == b.dtype
        assert jnp.allclose(a, b, rtol=1e-3, atol=1e-3)

    print("KERNEL_OK")
</pallas_src>

<mosaic_0001>
module attributes {stable_mosaic.version = 11 : i64} {
  func.func @kernel(%arg0: memref<37x3xf32, #tpu.memory_space<vmem>>, %arg1: memref<43x3xf32, #tpu.memory_space<vmem>>, %arg2: memref<5x4xf32, #tpu.memory_space<vmem>>, %arg3: memref<20x8xf32, #tpu.memory_space<vmem>>, %arg4: memref<40x16xf32, #tpu.memory_space<vmem>>, %arg5: memref<48x1xf32, #tpu.memory_space<vmem>>, %arg6: memref<5x4xf32, #tpu.memory_space<vmem>>, %arg7: memref<20x8xf32, #tpu.memory_space<vmem>>, %arg8: memref<40x16xf32, #tpu.memory_space<vmem>>, %arg9: memref<48x1xf32, #tpu.memory_space<vmem>>, %arg10: memref<1x4xf32, #tpu.memory_space<vmem>>, %arg11: memref<1x8xf32, #tpu.memory_space<vmem>>, %arg12: memref<1x16xf32, #tpu.memory_space<vmem>>, %arg13: memref<1x1xf32, #tpu.memory_space<vmem>>, %arg14: memref<1x4xf32, #tpu.memory_space<vmem>>, %arg15: memref<1x8xf32, #tpu.memory_space<vmem>>, %arg16: memref<1x16xf32, #tpu.memory_space<vmem>>, %arg17: memref<1x1xf32, #tpu.memory_space<vmem>>, %arg18: memref<36x4xf32, #tpu.memory_space<vmem>>, %arg19: memref<16x8xf32, #tpu.memory_space<vmem>>, %arg20: memref<28x16xf32, #tpu.memory_space<vmem>>, %arg21: memref<20x1xf32, #tpu.memory_space<vmem>>, %arg22: memref<42x4xf32, #tpu.memory_space<vmem>>, %arg23: memref<18x8xf32, #tpu.memory_space<vmem>>, %arg24: memref<36x16xf32, #tpu.memory_space<vmem>>, %arg25: memref<24x1xf32, #tpu.memory_space<vmem>>, %arg26: memref<17x12xf32, #tpu.memory_space<vmem>>, %arg27: memref<32x8xf32, #tpu.memory_space<vmem>>, %arg28: memref<22x16xf32, #tpu.memory_space<vmem>>, %arg29: memref<19x12xf32, #tpu.memory_space<vmem>>, %arg30: memref<40x8xf32, #tpu.memory_space<vmem>>, %arg31: memref<26x16xf32, #tpu.memory_space<vmem>>) attributes {dimension_semantics = [], scalar_prefetch = 0 : i64, scratch_operands = 6 : i64, tpu.core_type = #tpu.core_type<tc>} {
    %c0 = arith.constant 0 : index
    %c0_0 = arith.constant 0 : index
    %0 = vector.load %arg0[%c0, %c0_0] : memref<37x3xf32, #tpu.memory_space<vmem>>, vector<36x1xf32>
    %c0_1 = arith.constant 0 : index
    %c1 = arith.constant 1 : index
    %1 = vector.load %arg0[%c0_1, %c1] : memref<37x3xf32, #tpu.memory_space<vmem>>, vector<36x1xf32>
    %c0_2 = arith.constant 0 : index
    %c2 = arith.constant 2 : index
    %2 = vector.load %arg0[%c0_2, %c2] : memref<37x3xf32, #tpu.memory_space<vmem>>, vector<36x1xf32>
    %c1_3 = arith.constant 1 : index
    %c0_4 = arith.constant 0 : index
    %3 = vector.load %arg0[%c1_3, %c0_4] : memref<37x3xf32, #tpu.memory_space<vmem>>, vector<36x1xf32>
    %c1_5 = arith.constant 1 : index
    %c1_6 = arith.constant 1 : index
    %4 = vector.load %arg0[%c1_5, %c1_6] : memref<37x3xf32, #tpu.memory_space<vmem>>, vector<36x1xf32>
    %5 = tpu.concatenate %0, %1, %2, %3, %4 in 1 : vector<36x1xf32>, vector<36x1xf32>, vector<36x1xf32>, vector<36x1xf32>, vector<36x1xf32> -> vector<36x5xf32>
    %c0_7 = arith.constant 0 : index
    %c0_8 = arith.constant 0 : index
    %6 = vector.load %arg2[%c0_7, %c0_8] : memref<5x4xf32, #tpu.memory_space<vmem>>, vector<5x4xf32>
    %cst = arith.constant dense<0.000000e+00> : vector<36x4xf32>
    %7 = tpu.matmul %5, %6, %cst {dimension_numbers = #tpu.dot_dimension_numbers<[1], [0], [0], [1], [0, 0, 1, 1], [], []>} : vector<36x5xf32>, vector<5x4xf32>, vector<36x4xf32> -> vector<36x4xf32>
    %c0_9 = arith.constant 0 : index
    %c0_10 = arith.constant 0 : index
    %8 = vector.load %arg10[%c0_9, %c0_10] : memref<1x4xf32, #tpu.memory_space<vmem>>, vector<1x4xf32>
    %9 = vector.broadcast %8 : vector<1x4xf32> to vector<36x4xf32>
    %10 = arith.addf %7, %9 : vector<36x4xf32>
    %cst_11 = arith.constant 1.000000e-01 : f32
    %11 = vector.broadcast %cst_11 : f32 to vector<36x4xf32>
    %12 = arith.mulf %11, %10 : vector<36x4xf32>
    %13 = arith.maximumf %10, %12 : vector<36x4xf32>
    %c0_12 = arith.constant 0 : index
    %c0_13 = arith.constant 0 : index
    %14 = vector.load %arg18[%c0_12, %c0_13] : memref<36x4xf32, #tpu.memory_space<vmem>>, vector<36x4xf32>
    tpu.vector_store %arg18[%c0_12, %c0_13], %13 {strides = array<i32>} : memref<36x4xf32, #tpu.memory_space<vmem>>, vector<36x4xf32>,
    %cst_14 = arith.constant 0.000000e+00 : f32
    %15 = vector.broadcast %cst_14 : f32 to vector<17x12xf32>
    %c0_15 = arith.constant 0 : index
    %c0_16 = arith.constant 0 : index
    %16 = vector.load %arg26[%c0_15, %c0_16] : memref<17x12xf32, #tpu.memory_space<vmem>>, vector<17x12xf32>
    tpu.vector_store %arg26[%c0_15, %c0_16], %15 {strides = array<i32>} : memref<17x12xf32, #tpu.memory_space<vmem>>, vector<17x12xf32>,
    %17 = vector.extract_strided_slice %13 {offsets = [0, 0], sizes = [1, 4], strides = [1, 1]} : vector<36x4xf32> to vector<1x4xf32>
    %c0_17 = arith.constant 0 : index
    %c8 = arith.constant 8 : index
    %18 = vector.load %arg26[%c0_17, %c8] : memref<17x12xf32, #tpu.memory_space<vmem>>, vector<1x4xf32>
    tpu.vector_store %arg26[%c0_17, %c8], %17 {strides = array<i32>} : memref<17x12xf32, #tpu.memory_space<vmem>>, vector<1x4xf32>,
    %19 = vector.extract_strided_slice %13 {offsets = [1, 0], sizes = [1, 4], strides = [1, 1]} : vector<36x4xf32> to vector<1x4xf32>
    %c1_18 = arith.constant 1 : index
    %c0_19 = arith.constant 0 : index
    %20 = vector.load %arg26[%c1_18, %c0_19] : memref<17x12xf32, #tpu.memory_space<vmem>>, vector<1x4xf32>
    tpu.vector_store %arg26[%c1_18, %c0_19], %19 {strides = array<i32>} : memref<17x12xf32, #tpu.memory_space<vmem>>, vector<1x4xf32>,
    %21 = vector.extract_strided_slice %13 {offsets = [2, 0], sizes = [1, 4], strides = [1, 1]} : vector<36x4xf32> to vector<1x4xf32>
    %c1_20 = arith.constant 1 : index
    %c4 = arith.constant 4 : index
    %22 = vector.load %arg26[%c1_20, %c4] : memref<17x12xf32, #tpu.memory_space<vmem>>, vector<1x4xf32>
    tpu.vector_store %arg26[%c1_20, %c4], %21 {strides = array<i32>} : memref<17x12xf32, #tpu.memory_space<vmem>>, vector<1x4xf32>,
    %23 = vector.extract_strided_slice %13 {offsets = [3, 0], sizes = [1, 4], strides = [1, 1]} : vector<36x4xf32> to vector<1x4xf32>
    %c1_21 = arith.constant 1 : index
    %c8_22 = arith.constant 8 : index
    %24 = vector.load %arg26[%c1_21, %c8_22] : memref<17x12xf32, #tpu.memory_space<vmem>>, vector<1x4xf32>
    tpu.vector_store %arg26[%c1_21, %c8_22], %23 {strides = array<i32>} : memref<17x12xf32, #tpu.memory_space<vmem>>, vector<1x4xf32>,
    %25 = vector.extract_strided_slice %13 {offsets = [4, 0], sizes = [1, 4], strides = [1, 1]} : vector<36x4xf32> to vector<1x4xf32>
    %c2_23 = arith.constant 2 : index
    %c0_24 = arith.constant 0 : index
    %26 = vector.load %arg26[%c2_23, %c0_24] : memref<17x12xf32, #tpu.memory_space<vmem>>, vector<1x4xf32>
    tpu.vector_store %arg26[%c2_23, %c0_24], %25 {strides = array<i32>} : memref<17x12xf32, #tpu.memory_space<vmem>>, vector<1x4xf32>,
    %27 = vector.extract_strided_slice %13 {offsets = [5, 0], sizes = [1, 4], strides = [1, 1]} : vector<36x4xf32> to vector<1x4xf32>
    %c2_25 = arith.constant 2 : index
    %c4_26 = arith.constant 4 : index
    %28 = vector.load %arg26[%c2_25, %c4_26] : memref<17x12xf32, #tpu.memory_space<vmem>>, vector<1x4xf32>
    tpu.vector_store %arg26[%c2_25, %c4_26], %27 {strides = array<i32>} : memref<17x12xf32, #tpu.memory_space<vmem>>, vector<1x4xf32>,
    %29 = vector.extract_strided_slice %13 {offsets = [6, 0], sizes = [1, 4], strides = [1, 1]} : vector<36x4xf32> to vector<1x4xf32>
    %c2_27 = arith.constant 2 : index
    %c8_28 = arith.constant 8 : index
    %30 = vector.load %arg26[%c2_27, %c8_28] : memref<17x12xf32, #tpu.memory_space<vmem>>, vector<1x4xf32>
    tpu.vector_store %arg26[%c2_27, %c8_28], %29 {strides = array<i32>} : memref<17x12xf32, #tpu.memory_space<vmem>>, vector<1x4xf32>,
    %31 = vector.extract_strided_slice %13 {offsets = [7, 0], sizes = [1, 4], strides = [1, 1]} : vector<36x4xf32> to vector<1x4xf32>
    %c3 = arith.constant 3 : index
    %c0_29 = arith.constant 0 : index
    %32 = vector.load %arg26[%c3, %c0_29] : memref<17x12xf32, #tpu.memory_space<vmem>>, vector<1x4xf32>
    tpu.vector_store %arg26[%c3, %c0_29], %31 {strides = array<i32>} : memref<17x12xf32, #tpu.memory_space<vmem>>, vector<1x4xf32>,
    %33 = vector.extract_strided_slice %13 {offsets = [9, 0], sizes = [1, 4], strides = [1, 1]} : vector<36x4xf32> to vector<1x4xf32>
    %c4_30 = arith.constant 4 : index
    %c8_31 = arith.constant 8 : index
    %34 = vector.load %arg26[%c4_30, %c8_31] : memref<17x12xf32, #tpu.memory_space<vmem>>, vector<1x4xf32>
    tpu.vector_store %arg26[%c4_30, %c8_31], %33 {strides = array<i32>} : memref<17x12xf32, #tpu.memory_space<vmem>>, vector<1x4xf32>,
    %35 = vector.extract_strided_slice %13 {offsets = [10, 0], sizes = [1, 4], strides = [1, 1]} : vector<36x4xf32> to vector<1x4xf32>
    %c5 = arith.constant 5 : index
    %c0_32 = arith.constant 0 : index
    %36 = vector.load %arg26[%c5, %c0_32] : memref<17x12xf32, #tpu.memory_space<vmem>>, vector<1x4xf32>
    tpu.vector_store %arg26[%c5, %c0_32], %35 {strides = array<i32>} : memref<17x12xf32, #tpu.memory_space<vmem>>, vector<1x4xf32>,
    %37 = vector.extract_strided_slice %13 {offsets = [11, 0], sizes = [1, 4], strides = [1, 1]} : vector<36x4xf32> to vector<1x4xf32>
    %c5_33 = arith.constant 5 : index
    %c4_34 = arith.constant 4 : index
    %38 = vector.load %arg26[%c5_33, %c4_34] : memref<17x12xf32, #tpu.memory_space<vmem>>, vector<1x4xf32>
    tpu.vector_store %arg26[%c5_33, %c4_34], %37 {strides = array<i32>} : memref<17x12xf32, #tpu.memory_space<vmem>>, vector<1x4xf32>,
    %39 = vector.extract_strided_slice %13 {offsets = [12, 0], sizes = [1, 4], strides = [1, 1]} : vector<36x4xf32> to vector<1x4xf32>
    %c5_35 = arith.constant 5 : index
    %c8_36 = arith.constant 8 : index
    %40 = vector.load %arg26[%c5_35, %c8_36] : memref<17x12xf32, #tpu.memory_space<vmem>>, vector<1x4xf32>
    tpu.vector_store %arg26[%c5_35, %c8_36], %39 {strides = array<i32>} : memref<17x12xf32, #tpu.memory_space<vmem>>, vector<1x4xf32>,
    %41 = vector.extract_strided_slice %13 {offsets = [13, 0], sizes = [1, 4], strides = [1, 1]} : vector<36x4xf32> to vector<1x4xf32>
    %c6 = arith.constant 6 : index
    %c0_37 = arith.constant 0 : index
    %42 = vector.load %arg26[%c6, %c0_37] : memref<17x12xf32, #tpu.memory_space<vmem>>, vector<1x4xf32>
    tpu.vector_store %arg26[%c6, %c0_37], %41 {strides = array<i32>} : memref<17x12xf32, #tpu.memory_space<vmem>>, vector<1x4xf32>,
    %43 = vector.extract_strided_slice %13 {offsets = [14, 0], sizes = [1, 4], strides = [1, 1]} : vector<36x4xf32> to vector<1x4xf32>
    %c6_38 = arith.constant 6 : index
    %c4_39 = arith.constant 4 : index
    %44 = vector.load %arg26[%c6_38, %c4_39] : memref<17x12xf32, #tpu.memory_space<vmem>>, vector<1x4xf32>
    tpu.vector_store %arg26[%c6_38, %c4_39], %43 {strides = array<i32>} : memref<17x12xf32, #tpu.memory_space<vmem>>, vector<1x4xf32>,
    %45 = vector.extract_strided_slice %13 {offsets = [15, 0], sizes = [1, 4], strides = [1, 1]} : vector<36x4xf32> to vector<1x4xf32>
    %c6_40 = arith.constant 6 : index
    %c8_41 = arith.constant 8 : index
    %46 = vector.load %arg26[%c6_40, %c8_41] : memref<17x12xf32, #tpu.memory_space<vmem>>, vector<1x4xf32>
    tpu.vector_store %arg26[%c6_40, %c8_41], %45 {strides = array<i32>} : memref<17x12xf32, #tpu.memory_space<vmem>>, vector<1x4xf32>,
    %47 = vector.extract_strided_slice %13 {offsets = [16, 0], sizes = [1, 4], strides = [1, 1]} : vector<36x4xf32> to vector<1x4xf32>
    %c7 = arith.constant 7 : index
    %c0_42 = arith.constant 0 : index
    %48 = vector.load %arg26[%c7, %c0_42] : memref<17x12xf32, #tpu.memory_space<vmem>>, vector<1x4xf32>
    tpu.vector_store %arg26[%c7, %c0_42], %47 {strides = array<i32>} : memref<17x12xf32, #tpu.memory_space<vmem>>, vector<1x4xf32>,
    %49 = vector.extract_strided_slice %13 {offsets = [18, 0], sizes = [1, 4], strides = [1, 1]} : vector<36x4xf32> to vector<1x4xf32>
    %c8_43 = arith.constant 8 : index
    %c8_44 = arith.constant 8 : index
    %50 = vector.load %arg26[%c8_43, %c8_44] : memref<17x12xf32, #tpu.memory_space<vmem>>, vector<1x4xf32>
    tpu.vector_store %arg26[%c8_43, %c8_44], %49 {strides = array<i32>} : memref<17x12xf32, #tpu.memory_space<vmem>>, vector<1x4xf32>,
    %51 = vector.extract_strided_slice %13 {offsets = [19, 0], sizes = [1, 4], strides = [1, 1]} : vector<36x4xf32> to vector<1x4xf32>
    %c9 = arith.constant 9 : index
    %c0_45 = arith.constant 0 : index
    %52 = vector.load %arg26[%c9, %c0_45] : memref<17x12xf32, #tpu.memory_space<vmem>>, vector<1x4xf32>
    tpu.vector_store %arg26[%c9, %c0_45], %51 {strides = array<i32>} : memref<17x12xf32, #tpu.memory_space<vmem>>, vector<1x4xf32>,
    %53 = vector.extract_strided_slice %13 {offsets = [20, 0], sizes = [1, 4], strides = [1, 1]} : vector<36x4xf32> to vector<1x4xf32>
    %c9_46 = arith.constant 9 : index
    %c4_47 = arith.constant 4 : index
    %54 = vector.load %arg26[%c9_46, %c4_47] : memref<17x12xf32, #tpu.memory_space<vmem>>, vector<1x4xf32>
    tpu.vector_store %arg26[%c9_46, %c4_47], %53 {strides = array<i32>} : memref<17x12xf32, #tpu.memory_space<vmem>>, vector<1x4xf32>,
    %55 = vector.extract_strided_slice %13 {offsets = [21, 0], sizes = [1, 4], strides = [1, 1]} : vector<36x4xf32> to vector<1x4xf32>
    %c9_48 = arith.constant 9 : index
    %c8_49 = arith.constant 8 : index
    %56 = vector.load %arg26[%c9_48, %c8_49] : memref<17x12xf32, #tpu.memory_space<vmem>>, vector<1x4xf32>
    tpu.vector_store %arg26[%c9_48, %c8_49], %55 {strides = array<i32>} : memref<17x12xf32, #tpu.memory_space<vmem>>, vector<1x4xf32>,
    %57 = vector.extract_strided_slice %13 {offsets = [22, 0], sizes = [1, 4], strides = [1, 1]} : vector<36x4xf32> to vector<1x4xf32>
    %c10 = arith.constant 10 : index
    %c0_50 = arith.constant 0 : index
    %58 = vector.load %arg26[%c10, %c0_50] : memref<17x12xf32, #tpu.memory_space<vmem>>, vector<1x4xf32>
    tpu.vector_store %arg26[%c10, %c0_50], %57 {strides = array<i32>} : memref<17x12xf32, #tpu.memory_space<vmem>>, vector<1x4xf32>,
    %59 = vector.extract_strided_slice %13 {offsets = [23, 0], sizes = [1, 4], strides = [1, 1]} : vector<36x4xf32> to vector<1x4xf32>
    %c10_51 = arith.constant 10 : index
    %c4_52 = arith.constant 4 : index
    %60 = vector.load %arg26[%c10_51, %c4_52] : memref<17x12xf32, #tpu.memory_space<vmem>>, vector<1x4xf32>
    tpu.vector_store %arg26[%c10_51, %c4_52], %59 {strides = array<i32>} : memref<17x12xf32, #tpu.memory_space<vmem>>, vector<1x4xf32>,
    %61 = vector.extract_strided_slice %13 {offsets = [24, 0], sizes = [1, 4], strides = [1, 1]} : vector<36x4xf32> to vector<1x4xf32>
    %c10_53 = arith.constant 10 : index
    %c8_54 = arith.constant 8 : index
    %62 = vector.load %arg26[%c10_53, %c8_54] : memref<17x12xf32, #tpu.memory_space<vmem>>, vector<1x4xf32>
    tpu.vector_store %arg26[%c10_53, %c8_54], %61 {strides = array<i32>} : memref<17x12xf32, #tpu.memory_space<vmem>>, vector<1x4xf32>,
    %63 = vector.extract_strided_slice %13 {offsets = [25, 0], sizes = [1, 4], strides = [1, 1]} : vector<36x4xf32> to vector<1x4xf32>
    %c11 = arith.constant 11 : index
    %c0_55 = arith.constant 0 : index
    %64 = vector.load %arg26[%c11, %c0_55] : memref<17x12xf32, #tpu.memory_space<vmem>>, vector<1x4xf32>
    tpu.vector_store %arg26[%c11, %c0_55], %63 {strides = array<i32>} : memref<17x12xf32, #tpu.memory_space<vmem>>, vector<1x4xf32>,
    %65 = vector.extract_strided_slice %13 {offsets = [27, 0], sizes = [1, 4], strides = [1, 1]} : vector<36x4xf32> to vector<1x4xf32>
    %c12 = arith.constant 12 : index
    %c8_56 = arith.constant 8 : index
    %66 = vector.load %arg26[%c12, %c8_56] : memref<17x12xf32, #tpu.memory_space<vmem>>, vector<1x4xf32>
    tpu.vector_store %arg26[%c12, %c8_56], %65 {strides = array<i32>} : memref<17x12xf32, #tpu.memory_space<vmem>>, vector<1x4xf32>,
    %67 = vector.extract_strided_slice %13 {offsets = [28, 0], sizes = [1, 4], strides = [1, 1]} : vector<36x4xf32> to vector<1x4xf32>
    %c13 = arith.constant 13 : index
    %c0_57 = arith.constant 0 : index
    %68 = vector.load %arg26[%c13, %c0_57] : memref<17x12xf32, #tpu.memory_space<vmem>>, vector<1x4xf32>
    tpu.vector_store %arg26[%c13, %c0_57], %67 {strides = array<i32>} : memref<17x12xf32, #tpu.memory_space<vmem>>, vector<1x4xf32>,
    %69 = vector.extract_strided_slice %13 {offsets = [29, 0], sizes = [1, 4], strides = [1, 1]} : vector<36x4xf32> to vector<1x4xf32>
    %c13_58 = arith.constant 13 : index
    %c4_59 = arith.constant 4 : index
    %70 = vector.load %arg26[%c13_58, %c4_59] : memref<17x12xf32, #tpu.memory_space<vmem>>, vector<1x4xf32>
    tpu.vector_store %arg26[%c13_58, %c4_59], %69 {strides = array<i32>} : memref<17x12xf32, #tpu.memory_space<vmem>>, vector<1x4xf32>,
    %71 = vector.extract_strided_slice %13 {offsets = [30, 0], sizes = [1, 4], strides = [1, 1]} : vector<36x4xf32> to vector<1x4xf32>
    %c13_60 = arith.constant 13 : index
    %c8_61 = arith.constant 8 : index
    %72 = vector.load %arg26[%c13_60, %c8_61] : memref<17x12xf32, #tpu.memory_space<vmem>>, vector<1x4xf32>
    tpu.vector_store %arg26[%c13_60, %c8_61], %71 {strides = array<i32>} : memref<17x12xf32, #tpu.memory_space<vmem>>, vector<1x4xf32>,
    %73 = vector.extract_strided_slice %13 {offsets = [31, 0], sizes = [1, 4], strides = [1, 1]} : vector<36x4xf32> to vector<1x4xf32>
    %c14 = arith.constant 14 : index
    %c0_62 = arith.constant 0 : index
    %74 = vector.load %arg26[%c14, %c0_62] : memref<17x12xf32, #tpu.memory_space<vmem>>, vector<1x4xf32>
    tpu.vector_store %arg26[%c14, %c0_62], %73 {strides = array<i32>} : memref<17x12xf32, #tpu.memory_space<vmem>>, vector<1x4xf32>,
    %75 = vector.extract_strided_slice %13 {offsets = [32, 0], sizes = [1, 4], strides = [1, 1]} : vector<36x4xf32> to vector<1x4xf32>
    %c14_63 = arith.constant 14 : index
    %c4_64 = arith.constant 4 : index
    %76 = vector.load %arg26[%c14_63, %c4_64] : memref<17x12xf32, #tpu.memory_space<vmem>>, vector<1x4xf32>
    tpu.vector_store %arg26[%c14_63, %c4_64], %75 {strides = array<i32>} : memref<17x12xf32, #tpu.memory_space<vmem>>, vector<1x4xf32>,
    %77 = vector.extract_strided_slice %13 {offsets = [33, 0], sizes = [1, 4], strides = [1, 1]} : vector<36x4xf32> to vector<1x4xf32>
    %c14_65 = arith.constant 14 : index
    %c8_66 = arith.constant 8 : index
    %78 = vector.load %arg26[%c14_65, %c8_66] : memref<17x12xf32, #tpu.memory_space<vmem>>, vector<1x4xf32>
    tpu.vector_store %arg26[%c14_65, %c8_66], %77 {strides = array<i32>} : memref<17x12xf32, #tpu.memory_space<vmem>>, vector<1x4xf32>,
    %79 = vector.extract_strided_slice %13 {offsets = [34, 0], sizes = [1, 4], strides = [1, 1]} : vector<36x4xf32> to vector<1x4xf32>
    %c15 = arith.constant 15 : index
    %c0_67 = arith.constant 0 : index
    %80 = vector.load %arg26[%c15, %c0_67] : memref<17x12xf32, #tpu.memory_space<vmem>>, vector<1x4xf32>
    tpu.vector_store %arg26[%c15, %c0_67], %79 {strides = array<i32>} : memref<17x12xf32, #tpu.memory_space<vmem>>, vector<1x4xf32>,
    %c0_68 = arith.constant 0 : index
    %c0_69 = arith.constant 0 : index
    %81 = vector.load %arg26[%c0_68, %c0_69] : memref<17x12xf32, #tpu.memory_space<vmem>>, vector<16x4xf32>
    %c0_70 = arith.constant 0 : index
    %c4_71 = arith.constant 4 : index
    %82 = vector.load %arg26[%c0_70, %c4_71] : memref<17x12xf32, #tpu.memory_space<vmem>>, vector<16x4xf32>
    %c0_72 = arith.constant 0 : index
    %c8_73 = arith.constant 8 : index
    %83 = vector.load %arg26[%c0_72, %c8_73] : memref<17x12xf32, #tpu.memory_space<vmem>>, vector<16x4xf32>
    %c1_74 = arith.constant 1 : index
    %c0_75 = arith.constant 0 : index
    %84 = vector.load %arg26[%c1_74, %c0_75] : memref<17x12xf32, #tpu.memory_space<vmem>>, vector<16x4xf32>
    %c1_76 = arith.constant 1 : index
    %c4_77 = arith.constant 4 : index
    %85 = vector.load %arg26[%c1_76, %c4_77] : memref<17x12xf32, #tpu.memory_space<vmem>>, vector<16x4xf32>
    %86 = tpu.concatenate %81, %82, %83, %84, %85 in 1 : vector<16x4xf32>, vector<16x4xf32>, vector<16x4xf32>, vector<16x4xf32>, vector<16x4xf32> -> vector<16x20xf32>
    %c0_78 = arith.constant 0 : index
    %c0_79 = arith.constant 0 : index
    %87 = vector.load %arg3[%c0_78, %c0_79] : memref<20x8xf32, #tpu.memory_space<vmem>>, vector<20x8xf32>
    %cst_80 = arith.constant dense<0.000000e+00> : vector<16x8xf32>
    %88 = tpu.matmul %86, %87, %cst_80 {dimension_numbers = #tpu.dot_dimension_numbers<[1], [0], [0], [1], [0, 0, 1, 1], [], []>} : vector<16x20xf32>, vector<20x8xf32>, vector<16x8xf32> -> vector<16x8xf32>
    %c0_81 = arith.constant 0 : index
    %c0_82 = arith.constant 0 : index
    %89 = vector.load %arg11[%c0_81, %c0_82] : memref<1x8xf32, #tpu.memory_space<vmem>>, vector<1x8xf32>
    %90 = vector.broadcast %89 : vector<1x8xf32> to vector<16x8xf32>
    %91 = arith.addf %88, %90 : vector<16x8xf32>
    %cst_83 = arith.constant 1.000000e-01 : f32
    %92 = vector.broadcast %cst_83 : f32 to vector<16x8xf32>
    %93 = arith.mulf %92, %91 : vector<16x8xf32>
    %94 = arith.maximumf %91, %93 : vector<16x8xf32>
    %c0_84 = arith.constant 0 : index
    %c0_85 = arith.constant 0 : index
    %95 = vector.load %arg19[%c0_84, %c0_85] : memref<16x8xf32, #tpu.memory_space<vmem>>, vector<16x8xf32>
    tpu.vector_store %arg19[%c0_84, %c0_85], %94 {strides = array<i32>} : memref<16x8xf32, #tpu.memory_space<vmem>>, vector<16x8xf32>,
    %cst_86 = arith.constant 0.000000e+00 : f32
    %96 = vector.broadcast %cst_86 : f32 to vector<32x8xf32>
    %c0_87 = arith.constant 0 : index
    %c0_88 = arith.constant 0 : index
    %97 = vector.load %arg27[%c0_87, %c0_88] : memref<32x8xf32, #tpu.memory_space<vmem>>, vector<32x8xf32>
    tpu.vector_store %arg27[%c0_87, %c0_88], %96 {strides = array<i32>} : memref<32x8xf32, #tpu.memory_space<vmem>>, vector<32x8xf32>,
    %98 = vector.extract_strided_slice %94 {offsets = [0, 0], sizes = [3, 8], strides = [1, 1]} : vector<16x8xf32> to vector<3x8xf32>
    %c2_89 = arith.constant 2 : index
    %c0_90 = arith.constant 0 : index
    %99 = vector.load %arg27[%c2_89, %c0_90] : memref<32x8xf32, #tpu.memory_space<vmem>>, vector<3x8xf32>
    tpu.vector_store %arg27[%c2_89, %c0_90], %98 {strides = array<i32>} : memref<32x8xf32, #tpu.memory_space<vmem>>, vector<3x8xf32>,
    %100 = vector.extract_strided_slice %94 {offsets = [4, 0], sizes = [3, 8], strides = [1, 1]} : vector<16x8xf32> to vector<3x8xf32>
    %c9_91 = arith.constant 9 : index
    %c0_92 = arith.constant 0 : index
    %101 = vector.load %arg27[%c9_91, %c0_92] : memref<32x8xf32, #tpu.memory_space<vmem>>, vector<3x8xf32>
    tpu.vector_store %arg27[%c9_91, %c0_92], %100 {strides = array<i32>} : memref<32x8xf32, #tpu.memory_space<vmem>>, vector<3x8xf32>,
    %102 = vector.extract_strided_slice %94 {offsets = [8, 0], sizes = [3, 8], strides = [1, 1]} : vector<16x8xf32> to vector<3x8xf32>
    %c16 = arith.constant 16 : index
    %c0_93 = arith.constant 0 : index
    %103 = vector.load %arg27[%c16, %c0_93] : memref<32x8xf32, #tpu.memory_space<vmem>>, vector<3x8xf32>
    tpu.vector_store %arg27[%c16, %c0_93], %102 {strides = array<i32>} : memref<32x8xf32, #tpu.memory_space<vmem>>, vector<3x8xf32>,
    %104 = vector.extract_strided_slice %94 {offsets = [12, 0], sizes = [3, 8], strides = [1, 1]} : vector<16x8xf32> to vector<3x8xf32>
    %c23 = arith.constant 23 : index
    %c0_94 = arith.constant 0 : index
    %105 = vector.load %arg27[%c23, %c0_94] : memref<32x8xf32, #tpu.memory_space<vmem>>, vector<3x8xf32>
    tpu.vector_store %arg27[%c23, %c0_94], %104 {strides = array<i32>} : memref<32x8xf32, #tpu.memory_space<vmem>>, vector<3x8xf32>,
    %c0_95 = arith.constant 0 : index
    %c0_96 = arith.constant 0 : index
    %106 = vector.load %arg27[%c0_95, %c0_96] : memref<32x8xf32, #tpu.memory_space<vmem>>, vector<28x8xf32>
    %c1_97 = arith.constant 1 : index
    %c0_98 = arith.constant 0 : index
    %107 = vector.load %arg27[%c1_97, %c0_98] : memref<32x8xf32, #tpu.memory_space<vmem>>, vector<28x8xf32>
    %c2_99 = arith.constant 2 : index
    %c0_100 = arith.constant 0 : index
    %108 = vector.load %arg27[%c2_99, %c0_100] : memref<32x8xf32, #tpu.memory_space<vmem>>, vector<28x8xf32>
    %c3_101 = arith.constant 3 : index
    %c0_102 = arith.constant 0 : index
    %109 = vector.load %arg27[%c3_101, %c0_102] : memref<32x8xf32, #tpu.memory_space<vmem>>, vector<28x8xf32>
    %c4_103 = arith.constant 4 : index
    %c0_104 = arith.constant 0 : index
    %110 = vector.load %arg27[%c4_103, %c0_104] : memref<32x8xf32, #tpu.memory_space<vmem>>, vector<28x8xf32>
    %111 = tpu.concatenate %106, %107, %108, %109, %110 in 1 : vector<28x8xf32>, vector<28x8xf32>, vector<28x8xf32>, vector<28x8xf32>, vector<28x8xf32> -> vector<28x40xf32>
    %c0_105 = arith.constant 0 : index
    %c0_106 = arith.constant 0 : index
    %112 = vector.load %arg4[%c0_105, %c0_106] : memref<40x16xf32, #tpu.memory_space<vmem>>, vector<40x16xf32>
    %cst_107 = arith.constant dense<0.000000e+00> : vector<28x16xf32>
    %113 = tpu.matmul %111, %112, %cst_107 {dimension_numbers = #tpu.dot_dimension_numbers<[1], [0], [0], [1], [0, 0, 1, 1], [], []>} : vector<28x40xf32>, vector<40x16xf32>, vector<28x16xf32> -> vector<28x16xf32>
    %c0_108 = arith.constant 0 : index
    %c0_109 = arith.constant 0 : index
    %114 = vector.load %arg12[%c0_108, %c0_109] : memref<1x16xf32, #tpu.memory_space<vmem>>, vector<1x16xf32>
    %115 = vector.broadcast %114 : vector<1x16xf32> to vector<28x16xf32>
    %116 = arith.addf %113, %115 : vector<28x16xf32>
    %cst_110 = arith.constant 1.000000e-01 : f32
    %117 = vector.broadcast %cst_110 : f32 to vector<28x16xf32>
    %118 = arith.mulf %117, %116 : vector<28x16xf32>
    %119 = arith.maximumf %116, %118 : vector<28x16xf32>
    %c0_111 = arith.constant 0 : index
    %c0_112 = arith.constant 0 : index
    %120 = vector.load %arg20[%c0_111, %c0_112] : memref<28x16xf32, #tpu.memory_space<vmem>>, vector<28x16xf32>
    tpu.vector_store %arg20[%c0_111, %c0_112], %119 {strides = array<i32>} : memref<28x16xf32, #tpu.memory_space<vmem>>, vector<28x16xf32>,
    %cst_113 = arith.constant 0.000000e+00 : f32
    %121 = vector.broadcast %cst_113 : f32 to vector<22x16xf32>
    %c0_114 = arith.constant 0 : index
    %c0_115 = arith.constant 0 : index
    %122 = vector.load %arg28[%c0_114, %c0_115] : memref<22x16xf32, #tpu.memory_space<vmem>>, vector<22x16xf32>
    tpu.vector_store %arg28[%c0_114, %c0_115], %121 {strides = array<i32>} : memref<22x16xf32, #tpu.memory_space<vmem>>, vector<22x16xf32>,
    %123 = vector.extract_strided_slice %119 {offsets = [0, 0], sizes = [3, 16], strides = [1, 1]} : vector<28x16xf32> to vector<3x16xf32>
    %c1_116 = arith.constant 1 : index
    %c0_117 = arith.constant 0 : index
    %124 = vector.load %arg28[%c1_116, %c0_117] : memref<22x16xf32, #tpu.memory_space<vmem>>, vector<3x16xf32>
    tpu.vector_store %arg28[%c1_116, %c0_117], %123 {strides = array<i32>} : memref<22x16xf32, #tpu.memory_space<vmem>>, vector<3x16xf32>,
    %125 = vector.extract_strided_slice %119 {offsets = [7, 0], sizes = [3, 16], strides = [1, 1]} : vector<28x16xf32> to vector<3x16xf32>
    %c6_118 = arith.constant 6 : index
    %c0_119 = arith.constant 0 : index
    %126 = vector.load %arg28[%c6_118, %c0_119] : memref<22x16xf32, #tpu.memory_space<vmem>>, vector<3x16xf32>
    tpu.vector_store %arg28[%c6_118, %c0_119], %125 {strides = array<i32>} : memref<22x16xf32, #tpu.memory_space<vmem>>, vector<3x16xf32>,
    %127 = vector.extract_strided_slice %119 {offsets = [14, 0], sizes = [3, 16], strides = [1, 1]} : vector<28x16xf32> to vector<3x16xf32>
    %c11_120 = arith.constant 11 : index
    %c0_121 = arith.constant 0 : index
    %128 = vector.load %arg28[%c11_120, %c0_121] : memref<22x16xf32, #tpu.memory_space<vmem>>, vector<3x16xf32>
    tpu.vector_store %arg28[%c11_120, %c0_121], %127 {strides = array<i32>} : memref<22x16xf32, #tpu.memory_space<vmem>>, vector<3x16xf32>,
    %129 = vector.extract_strided_slice %119 {offsets = [21, 0], sizes = [3, 16], strides = [1, 1]} : vector<28x16xf32> to vector<3x16xf32>
    %c16_122 = arith.constant 16 : index
    %c0_123 = arith.constant 0 : index
    %130 = vector.load %arg28[%c16_122, %c0_123] : memref<22x16xf32, #tpu.memory_space<vmem>>, vector<3x16xf32>
    tpu.vector_store %arg28[%c16_122, %c0_123], %129 {strides = array<i32>} : memref<22x16xf32, #tpu.memory_space<vmem>>, vector<3x16xf32>,
    %c0_124 = arith.constant 0 : index
    %c0_125 = arith.constant 0 : index
    %131 = vector.load %arg28[%c0_124, %c0_125] : memref<22x16xf32, #tpu.memory_space<vmem>>, vector<20x16xf32>
    %c1_126 = arith.constant 1 : index
    %c0_127 = arith.constant 0 : index
    %132 = vector.load %arg28[%c1_126, %c0_127] : memref<22x16xf32, #tpu.memory_space<vmem>>, vector<20x16xf32>
    %c2_128 = arith.constant 2 : index
    %c0_129 = arith.constant 0 : index
    %133 = vector.load %arg28[%c2_128, %c0_129] : memref<22x16xf32, #tpu.memory_space<vmem>>, vector<20x16xf32>
    %134 = tpu.concatenate %131, %132, %133 in 1 : vector<20x16xf32>, vector<20x16xf32>, vector<20x16xf32> -> vector<20x48xf32>
    %c0_130 = arith.constant 0 : index
    %c0_131 = arith.constant 0 : index
    %135 = vector.load %arg5[%c0_130, %c0_131] : memref<48x1xf32, #tpu.memory_space<vmem>>, vector<48x1xf32>
    %cst_132 = arith.constant dense<0.000000e+00> : vector<20x1xf32>
    %136 = tpu.matmul %134, %135, %cst_132 {dimension_numbers = #tpu.dot_dimension_numbers<[1], [0], [0], [1], [0, 0, 1, 1], [], []>} : vector<20x48xf32>, vector<48x1xf32>, vector<20x1xf32> -> vector<20x1xf32>
    %c0_133 = arith.constant 0 : index
    %c0_134 = arith.constant 0 : index
    %137 = vector.load %arg13[%c0_133, %c0_134] : memref<1x1xf32, #tpu.memory_space<vmem>>, vector<1x1xf32>
    %138 = vector.broadcast %137 : vector<1x1xf32> to vector<20x1xf32>
    %139 = arith.addf %136, %138 : vector<20x1xf32>
    %c0_135 = arith.constant 0 : index
    %c0_136 = arith.constant 0 : index
    %140 = vector.load %arg21[%c0_135, %c0_136] : memref<20x1xf32, #tpu.memory_space<vmem>>, vector<20x1xf32>
    tpu.vector_store %arg21[%c0_135, %c0_136], %139 {strides = array<i32>} : memref<20x1xf32, #tpu.memory_space<vmem>>, vector<20x1xf32>,
    %c0_137 = arith.constant 0 : index
    %c0_138 = arith.constant 0 : index
    %141 = vector.load %arg1[%c0_137, %c0_138] : memref<43x3xf32, #tpu.memory_space<vmem>>, vector<42x1xf32>
    %c0_139 = arith.constant 0 : index
    %c1_140 = arith.constant 1 : index
    %142 = vector.load %arg1[%c0_139, %c1_140] : memref<43x3xf32, #tpu.memory_space<vmem>>, vector<42x1xf32>
    %c0_141 = arith.constant 0 : index
    %c2_142 = arith.constant 2 : index
    %143 = vector.load %arg1[%c0_141, %c2_142] : memref<43x3xf32, #tpu.memory_space<vmem>>, vector<42x1xf32>
    %c1_143 = arith.constant 1 : index
    %c0_144 = arith.constant 0 : index
    %144 = vector.load %arg1[%c1_143, %c0_144] : memref<43x3xf32, #tpu.memory_space<vmem>>, vector<42x1xf32>
    %c1_145 = arith.constant 1 : index
    %c1_146 = arith.constant 1 : index
    %145 = vector.load %arg1[%c1_145, %c1_146] : memref<43x3xf32, #tpu.memory_space<vmem>>, vector<42x1xf32>
    %146 = tpu.concatenate %141, %142, %143, %144, %145 in 1 : vector<42x1xf32>, vector<42x1xf32>, vector<42x1xf32>, vector<42x1xf32>, vector<42x1xf32> -> vector<42x5xf32>
    %c0_147 = arith.constant 0 : index
    %c0_148 = arith.constant 0 : index
    %147 = vector.load %arg6[%c0_147, %c0_148] : memref<5x4xf32, #tpu.memory_space<vmem>>, vector<5x4xf32>
    %cst_149 = arith.constant dense<0.000000e+00> : vector<42x4xf32>
    %148 = tpu.matmul %146, %147, %cst_149 {dimension_numbers = #tpu.dot_dimension_numbers<[1], [0], [0], [1], [0, 0, 1, 1], [], []>} : vector<42x5xf32>, vector<5x4xf32>, vector<42x4xf32> -> vector<42x4xf32>
    %c0_150 = arith.constant 0 : index
    %c0_151 = arith.constant 0 : index
    %149 = vector.load %arg14[%c0_150, %c0_151] : memref<1x4xf32, #tpu.memory_space<vmem>>, vector<1x4xf32>
    %150 = vector.broadcast %149 : vector<1x4xf32> to vector<42x4xf32>
    %151 = arith.addf %148, %150 : vector<42x4xf32>
    %cst_152 = arith.constant 1.000000e-01 : f32
    %152 = vector.broadcast %cst_152 : f32 to vector<42x4xf32>
    %153 = arith.mulf %152, %151 : vector<42x4xf32>
    %154 = arith.maximumf %151, %153 : vector<42x4xf32>
    %c0_153 = arith.constant 0 : index
    %c0_154 = arith.constant 0 : index
    %155 = vector.load %arg22[%c0_153, %c0_154] : memref<42x4xf32, #tpu.memory_space<vmem>>, vector<42x4xf32>
    tpu.vector_store %arg22[%c0_153, %c0_154], %154 {strides = array<i32>} : memref<42x4xf32, #tpu.memory_space<vmem>>, vector<42x4xf32>,
    %cst_155 = arith.constant 0.000000e+00 : f32
    %156 = vector.broadcast %cst_155 : f32 to vector<19x12xf32>
    %c0_156 = arith.constant 0 : index
    %c0_157 = arith.constant 0 : index
    %157 = vector.load %arg29[%c0_156, %c0_157] : memref<19x12xf32, #tpu.memory_space<vmem>>, vector<19x12xf32>
    tpu.vector_store %arg29[%c0_156, %c0_157], %156 {strides = array<i32>} : memref<19x12xf32, #tpu.memory_space<vmem>>, vector<19x12xf32>,
    %158 = vector.extract_strided_slice %154 {offsets = [0, 0], sizes = [1, 4], strides = [1, 1]} : vector<42x4xf32> to vector<1x4xf32>
    %c0_158 = arith.constant 0 : index
    %c8_159 = arith.constant 8 : index
    %159 = vector.load %arg29[%c0_158, %c8_159] : memref<19x12xf32, #tpu.memory_space<vmem>>, vector<1x4xf32>
    tpu.vector_store %arg29[%c0_158, %c8_159], %158 {strides = array<i32>} : memref<19x12xf32, #tpu.memory_space<vmem>>, vector<1x4xf32>,
    %160 = vector.extract_strided_slice %154 {offsets = [1, 0], sizes = [1, 4], strides = [1, 1]} : vector<42x4xf32> to vector<1x4xf32>
    %c1_160 = arith.constant 1 : index
    %c0_161 = arith.constant 0 : index
    %161 = vector.load %arg29[%c1_160, %c0_161] : memref<19x12xf32, #tpu.memory_space<vmem>>, vector<1x4xf32>
    tpu.vector_store %arg29[%c1_160, %c0_161], %160 {strides = array<i32>} : memref<19x12xf32, #tpu.memory_space<vmem>>, vector<1x4xf32>,
    %162 = vector.extract_strided_slice %154 {offsets = [2, 0], sizes = [1, 4], strides = [1, 1]} : vector<42x4xf32> to vector<1x4xf32>
    %c1_162 = arith.constant 1 : index
    %c4_163 = arith.constant 4 : index
    %163 = vector.load %arg29[%c1_162, %c4_163] : memref<19x12xf32, #tpu.memory_space<vmem>>, vector<1x4xf32>
    tpu.vector_store %arg29[%c1_162, %c4_163], %162 {strides = array<i32>} : memref<19x12xf32, #tpu.memory_space<vmem>>, vector<1x4xf32>,
    %164 = vector.extract_strided_slice %154 {offsets = [3, 0], sizes = [1, 4], strides = [1, 1]} : vector<42x4xf32> to vector<1x4xf32>
    %c1_164 = arith.constant 1 : index
    %c8_165 = arith.constant 8 : index
    %165 = vector.load %arg29[%c1_164, %c8_165] : memref<19x12xf32, #tpu.memory_space<vmem>>, vector<1x4xf32>
    tpu.vector_store %arg29[%c1_164, %c8_165], %164 {strides = array<i32>} : memref<19x12xf32, #tpu.memory_space<vmem>>, vector<1x4xf32>,
    %166 = vector.extract_strided_slice %154 {offsets = [4, 0], sizes = [1, 4], strides = [1, 1]} : vector<42x4xf32> to vector<1x4xf32>
    %c2_166 = arith.constant 2 : index
    %c0_167 = arith.constant 0 : index
    %167 = vector.load %arg29[%c2_166, %c0_167] : memref<19x12xf32, #tpu.memory_space<vmem>>, vector<1x4xf32>
    tpu.vector_store %arg29[%c2_166, %c0_167], %166 {strides = array<i32>} : memref<19x12xf32, #tpu.memory_space<vmem>>, vector<1x4xf32>,
    %168 = vector.extract_strided_slice %154 {offsets = [5, 0], sizes = [1, 4], strides = [1, 1]} : vector<42x4xf32> to vector<1x4xf32>
    %c2_168 = arith.constant 2 : index
    %c4_169 = arith.constant 4 : index
    %169 = vector.load %arg29[%c2_168, %c4_169] : memref<19x12xf32, #tpu.memory_space<vmem>>, vector<1x4xf32>
    tpu.vector_store %arg29[%c2_168, %c4_169], %168 {strides = array<i32>} : memref<19x12xf32, #tpu.memory_space<vmem>>, vector<1x4xf32>,
    %170 = vector.extract_strided_slice %154 {offsets = [7, 0], sizes = [1, 4], strides = [1, 1]} : vector<42x4xf32> to vector<1x4xf32>
    %c3_170 = arith.constant 3 : index
    %c8_171 = arith.constant 8 : index
    %171 = vector.load %arg29[%c3_170, %c8_171] : memref<19x12xf32, #tpu.memory_space<vmem>>, vector<1x4xf32>
    tpu.vector_store %arg29[%c3_170, %c8_171], %170 {strides = array<i32>} : memref<19x12xf32, #tpu.memory_space<vmem>>, vector<1x4xf32>,
    %172 = vector.extract_strided_slice %154 {offsets = [8, 0], sizes = [1, 4], strides = [1, 1]} : vector<42x4xf32> to vector<1x4xf32>
    %c4_172 = arith.constant 4 : index
    %c0_173 = arith.constant 0 : index
    %173 = vector.load %arg29[%c4_172, %c0_173] : memref<19x12xf32, #tpu.memory_space<vmem>>, vector<1x4xf32>
    tpu.vector_store %arg29[%c4_172, %c0_173], %172 {strides = array<i32>} : memref<19x12xf32, #tpu.memory_space<vmem>>, vector<1x4xf32>,
    %174 = vector.extract_strided_slice %154 {offsets = [9, 0], sizes = [1, 4], strides = [1, 1]} : vector<42x4xf32> to vector<1x4xf32>
    %c4_174 = arith.constant 4 : index
    %c4_175 = arith.constant 4 : index
    %175 = vector.load %arg29[%c4_174, %c4_175] : memref<19x12xf32, #tpu.memory_space<vmem>>, vector<1x4xf32>
    tpu.vector_store %arg29[%c4_174, %c4_175], %174 {strides = array<i32>} : memref<19x12xf32, #tpu.memory_space<vmem>>, vector<1x4xf32>,
    %176 = vector.extract_strided_slice %154 {offsets = [10, 0], sizes = [1, 4], strides = [1, 1]} : vector<42x4xf32> to vector<1x4xf32>
    %c4_176 = arith.constant 4 : index
    %c8_177 = arith.constant 8 : index
    %177 = vector.load %arg29[%c4_176, %c8_177] : memref<19x12xf32, #tpu.memory_space<vmem>>, vector<1x4xf32>
    tpu.vector_store %arg29[%c4_176, %c8_177], %176 {strides = array<i32>} : memref<19x12xf32, #tpu.memory_space<vmem>>, vector<1x4xf32>,
    %178 = vector.extract_strided_slice %154 {offsets = [11, 0], sizes = [1, 4], strides = [1, 1]} : vector<42x4xf32> to vector<1x4xf32>
    %c5_178 = arith.constant 5 : index
    %c0_179 = arith.constant 0 : index
    %179 = vector.load %arg29[%c5_178, %c0_179] : memref<19x12xf32, #tpu.memory_space<vmem>>, vector<1x4xf32>
    tpu.vector_store %arg29[%c5_178, %c0_179], %178 {strides = array<i32>} : memref<19x12xf32, #tpu.memory_space<vmem>>, vector<1x4xf32>,
    %180 = vector.extract_strided_slice %154 {offsets = [12, 0], sizes = [1, 4], strides = [1, 1]} : vector<42x4xf32> to vector<1x4xf32>
    %c5_180 = arith.constant 5 : index
    %c4_181 = arith.constant 4 : index
    %181 = vector.load %arg29[%c5_180, %c4_181] : memref<19x12xf32, #tpu.memory_space<vmem>>, vector<1x4xf32>
    tpu.vector_store %arg29[%c5_180, %c4_181], %180 {strides = array<i32>} : memref<19x12xf32, #tpu.memory_space<vmem>>, vector<1x4xf32>,
    %182 = vector.extract_strided_slice %154 {offsets = [14, 0], sizes = [1, 4], strides = [1, 1]} : vector<42x4xf32> to vector<1x4xf32>
    %c6_182 = arith.constant 6 : index
    %c8_183 = arith.constant 8 : index
    %183 = vector.load %arg29[%c6_182, %c8_183] : memref<19x12xf32, #tpu.memory_space<vmem>>, vector<1x4xf32>
    tpu.vector_store %arg29[%c6_182, %c8_183], %182 {strides = array<i32>} : memref<19x12xf32, #tpu.memory_space<vmem>>, vector<1x4xf32>,
    %184 = vector.extract_strided_slice %154 {offsets = [15, 0], sizes = [1, 4], strides = [1, 1]} : vector<42x4xf32> to vector<1x4xf32>
    %c7_184 = arith.constant 7 : index
    %c0_185 = arith.constant 0 : index
    %185 = vector.load %arg29[%c7_184, %c0_185] : memref<19x12xf32, #tpu.memory_space<vmem>>, vector<1x4xf32>
    tpu.vector_store %arg29[%c7_184, %c0_185], %184 {strides = array<i32>} : memref<19x12xf32, #tpu.memory_space<vmem>>, vector<1x4xf32>,
    %186 = vector.extract_strided_slice %154 {offsets = [16, 0], sizes = [1, 4], strides = [1, 1]} : vector<42x4xf32> to vector<1x4xf32>
    %c7_186 = arith.constant 7 : index
    %c4_187 = arith.constant 4 : index
    %187 = vector.load %arg29[%c7_186, %c4_187] : memref<19x12xf32, #tpu.memory_space<vmem>>, vector<1x4xf32>
    tpu.vector_store %arg29[%c7_186, %c4_187], %186 {strides = array<i32>} : memref<19x12xf32, #tpu.memory_space<vmem>>, vector<1x4xf32>,
    %188 = vector.extract_strided_slice %154 {offsets = [17, 0], sizes = [1, 4], strides = [1, 1]} : vector<42x4xf32> to vector<1x4xf32>
    %c7_188 = arith.constant 7 : index
    %c8_189 = arith.constant 8 : index
    %189 = vector.load %arg29[%c7_188, %c8_189] : memref<19x12xf32, #tpu.memory_space<vmem>>, vector<1x4xf32>
    tpu.vector_store %arg29[%c7_188, %c8_189], %188 {strides = array<i32>} : memref<19x12xf32, #tpu.memory_space<vmem>>, vector<1x4xf32>,
    %190 = vector.extract_strided_slice %154 {offsets = [18, 0], sizes = [1, 4], strides = [1, 1]} : vector<42x4xf32> to vector<1x4xf32>
    %c8_190 = arith.constant 8 : index
    %c0_191 = arith.constant 0 : index
    %191 = vector.load %arg29[%c8_190, %c0_191] : memref<19x12xf32, #tpu.memory_space<vmem>>, vector<1x4xf32>
    tpu.vector_store %arg29[%c8_190, %c0_191], %190 {strides = array<i32>} : memref<19x12xf32, #tpu.memory_space<vmem>>, vector<1x4xf32>,
    %192 = vector.extract_strided_slice %154 {offsets = [19, 0], sizes = [1, 4], strides = [1, 1]} : vector<42x4xf32> to vector<1x4xf32>
    %c8_192 = arith.constant 8 : index
    %c4_193 = arith.constant 4 : index
    %193 = vector.load %arg29[%c8_192, %c4_193] : memref<19x12xf32, #tpu.memory_space<vmem>>, vector<1x4xf32>
    tpu.vector_store %arg29[%c8_192, %c4_193], %192 {strides = array<i32>} : memref<19x12xf32, #tpu.memory_space<vmem>>, vector<1x4xf32>,
    %194 = vector.extract_strided_slice %154 {offsets = [21, 0], sizes = [1, 4], strides = [1, 1]} : vector<42x4xf32> to vector<1x4xf32>
    %c9_194 = arith.constant 9 : index
    %c8_195 = arith.constant 8 : index
    %195 = vector.load %arg29[%c9_194, %c8_195] : memref<19x12xf32, #tpu.memory_space<vmem>>, vector<1x4xf32>
    tpu.vector_store %arg29[%c9_194, %c8_195], %194 {strides = array<i32>} : memref<19x12xf32, #tpu.memory_space<vmem>>, vector<1x4xf32>,
    %196 = vector.extract_strided_slice %154 {offsets = [22, 0], sizes = [1, 4], strides = [1, 1]} : vector<42x4xf32> to vector<1x4xf32>
    %c10_196 = arith.constant 10 : index
    %c0_197 = arith.constant 0 : index
    %197 = vector.load %arg29[%c10_196, %c0_197] : memref<19x12xf32, #tpu.memory_space<vmem>>, vector<1x4xf32>
    tpu.vector_store %arg29[%c10_196, %c0_197], %196 {strides = array<i32>} : memref<19x12xf32, #tpu.memory_space<vmem>>, vector<1x4xf32>,
    %198 = vector.extract_strided_slice %154 {offsets = [23, 0], sizes = [1, 4], strides = [1, 1]} : vector<42x4xf32> to vector<1x4xf32>
    %c10_198 = arith.constant 10 : index
    %c4_199 = arith.constant 4 : index
    %199 = vector.load %arg29[%c10_198, %c4_199] : memref<19x12xf32, #tpu.memory_space<vmem>>, vector<1x4xf32>
    tpu.vector_store %arg29[%c10_198, %c4_199], %198 {strides = array<i32>} : memref<19x12xf32, #tpu.memory_space<vmem>>, vector<1x4xf32>,
    %200 = vector.extract_strided_slice %154 {offsets = [24, 0], sizes = [1, 4], strides = [1, 1]} : vector<42x4xf32> to vector<1x4xf32>
    %c10_200 = arith.constant 10 : index
    %c8_201 = arith.constant 8 : index
    %201 = vector.load %arg29[%c10_200, %c8_201] : memref<19x12xf32, #tpu.memory_space<vmem>>, vector<1x4xf32>
    tpu.vector_store %arg29[%c10_200, %c8_201], %200 {strides = array<i32>} : memref<19x12xf32, #tpu.memory_space<vmem>>, vector<1x4xf32>,
    %202 = vector.extract_strided_slice %154 {offsets = [25, 0], sizes = [1, 4], strides = [1, 1]} : vector<42x4xf32> to vector<1x4xf32>
    %c11_202 = arith.constant 11 : index
    %c0_203 = arith.constant 0 : index
    %203 = vector.load %arg29[%c11_202, %c0_203] : memref<19x12xf32, #tpu.memory_space<vmem>>, vector<1x4xf32>
    tpu.vector_store %arg29[%c11_202, %c0_203], %202 {strides = array<i32>} : memref<19x12xf32, #tpu.memory_space<vmem>>, vector<1x4xf32>,
    %204 = vector.extract_strided_slice %154 {offsets = [26, 0], sizes = [1, 4], strides = [1, 1]} : vector<42x4xf32> to vector<1x4xf32>
    %c11_204 = arith.constant 11 : index
    %c4_205 = arith.constant 4 : index
    %205 = vector.load %arg29[%c11_204, %c4_205] : memref<19x12xf32, #tpu.memory_space<vmem>>, vector<1x4xf32>
    tpu.vector_store %arg29[%c11_204, %c4_205], %204 {strides = array<i32>} : memref<19x12xf32, #tpu.memory_space<vmem>>, vector<1x4xf32>,
    %206 = vector.extract_strided_slice %154 {offsets = [28, 0], sizes = [1, 4], strides = [1, 1]} : vector<42x4xf32> to vector<1x4xf32>
    %c12_206 = arith.constant 12 : index
    %c8_207 = arith.constant 8 : index
    %207 = vector.load %arg29[%c12_206, %c8_207] : memref<19x12xf32, #tpu.memory_space<vmem>>, vector<1x4xf32>
    tpu.vector_store %arg29[%c12_206, %c8_207], %206 {strides = array<i32>} : memref<19x12xf32, #tpu.memory_space<vmem>>, vector<1x4xf32>,
    %208 = vector.extract_strided_slice %154 {offsets = [29, 0], sizes = [1, 4], strides = [1, 1]} : vector<42x4xf32> to vector<1x4xf32>
    %c13_208 = arith.constant 13 : index
    %c0_209 = arith.constant 0 : index
    %209 = vector.load %arg29[%c13_208, %c0_209] : memref<19x12xf32, #tpu.memory_space<vmem>>, vector<1x4xf32>
    tpu.vector_store %arg29[%c13_208, %c0_209], %208 {strides = array<i32>} : memref<19x12xf32, #tpu.memory_space<vmem>>, vector<1x4xf32>,
    %210 = vector.extract_strided_slice %154 {offsets = [30, 0], sizes = [1, 4], strides = [1, 1]} : vector<42x4xf32> to vector<1x4xf32>
    %c13_210 = arith.constant 13 : index
    %c4_211 = arith.constant 4 : index
    %211 = vector.load %arg29[%c13_210, %c4_211] : memref<19x12xf32, #tpu.memory_space<vmem>>, vector<1x4xf32>
    tpu.vector_store %arg29[%c13_210, %c4_211], %210 {strides = array<i32>} : memref<19x12xf32, #tpu.memory_space<vmem>>, vector<1x4xf32>,
    %212 = vector.extract_strided_slice %154 {offsets = [31, 0], sizes = [1, 4], strides = [1, 1]} : vector<42x4xf32> to vector<1x4xf32>
    %c13_212 = arith.constant 13 : index
    %c8_213 = arith.constant 8 : index
    %213 = vector.load %arg29[%c13_212, %c8_213] : memref<19x12xf32, #tpu.memory_space<vmem>>, vector<1x4xf32>
    tpu.vector_store %arg29[%c13_212, %c8_213], %212 {strides = array<i32>} : memref<19x12xf32, #tpu.memory_space<vmem>>, vector<1x4xf32>,
    %214 = vector.extract_strided_slice %154 {offsets = [32, 0], sizes = [1, 4], strides = [1, 1]} : vector<42x4xf32> to vector<1x4xf32>
    %c14_214 = arith.constant 14 : index
    %c0_215 = arith.constant 0 : index
    %215 = vector.load %arg29[%c14_214, %c0_215] : memref<19x12xf32, #tpu.memory_space<vmem>>, vector<1x4xf32>
    tpu.vector_store %arg29[%c14_214, %c0_215], %214 {strides = array<i32>} : memref<19x12xf32, #tpu.memory_space<vmem>>, vector<1x4xf32>,
    %216 = vector.extract_strided_slice %154 {offsets = [33, 0], sizes = [1, 4], strides = [1, 1]} : vector<42x4xf32> to vector<1x4xf32>
    %c14_216 = arith.constant 14 : index
    %c4_217 = arith.constant 4 : index
    %217 = vector.load %arg29[%c14_216, %c4_217] : memref<19x12xf32, #tpu.memory_space<vmem>>, vector<1x4xf32>
    tpu.vector_store %arg29[%c14_216, %c4_217], %216 {strides = array<i32>} : memref<19x12xf32, #tpu.memory_space<vmem>>, vector<1x4xf32>,
    %218 = vector.extract_strided_slice %154 {offsets = [35, 0], sizes = [1, 4], strides = [1, 1]} : vector<42x4xf32> to vector<1x4xf32>
    %c15_218 = arith.constant 15 : index
    %c8_219 = arith.constant 8 : index
    %219 = vector.load %arg29[%c15_218, %c8_219] : memref<19x12xf32, #tpu.memory_space<vmem>>, vector<1x4xf32>
    tpu.vector_store %arg29[%c15_218, %c8_219], %218 {strides = array<i32>} : memref<19x12xf32, #tpu.memory_space<vmem>>, vector<1x4xf32>,
    %220 = vector.extract_strided_slice %154 {offsets = [36, 0], sizes = [1, 4], strides = [1, 1]} : vector<42x4xf32> to vector<1x4xf32>
    %c16_220 = arith.constant 16 : index
    %c0_221 = arith.constant 0 : index
    %221 = vector.load %arg29[%c16_220, %c0_221] : memref<19x12xf32, #tpu.memory_space<vmem>>, vector<1x4xf32>
    tpu.vector_store %arg29[%c16_220, %c0_221], %220 {strides = array<i32>} : memref<19x12xf32, #tpu.memory_space<vmem>>, vector<1x4xf32>,
    %222 = vector.extract_strided_slice %154 {offsets = [37, 0], sizes = [1, 4], strides = [1, 1]} : vector<42x4xf32> to vector<1x4xf32>
    %c16_222 = arith.constant 16 : index
    %c4_223 = arith.constant 4 : index
    %223 = vector.load %arg29[%c16_222, %c4_223] : memref<19x12xf32, #tpu.memory_space<vmem>>, vector<1x4xf32>
    tpu.vector_store %arg29[%c16_222, %c4_223], %222 {strides = array<i32>} : memref<19x12xf32, #tpu.memory_space<vmem>>, vector<1x4xf32>,
    %224 = vector.extract_strided_slice %154 {offsets = [38, 0], sizes = [1, 4], strides = [1, 1]} : vector<42x4xf32> to vector<1x4xf32>
    %c16_224 = arith.constant 16 : index
    %c8_225 = arith.constant 8 : index
    %225 = vector.load %arg29[%c16_224, %c8_225] : memref<19x12xf32, #tpu.memory_space<vmem>>, vector<1x4xf32>
    tpu.vector_store %arg29[%c16_224, %c8_225], %224 {strides = array<i32>} : memref<19x12xf32, #tpu.memory_space<vmem>>, vector<1x4xf32>,
    %226 = vector.extract_strided_slice %154 {offsets = [39, 0], sizes = [1, 4], strides = [1, 1]} : vector<42x4xf32> to vector<1x4xf32>
    %c17 = arith.constant 17 : index
    %c0_226 = arith.constant 0 : index
    %227 = vector.load %arg29[%c17, %c0_226] : memref<19x12xf32, #tpu.memory_space<vmem>>, vector<1x4xf32>
    tpu.vector_store %arg29[%c17, %c0_226], %226 {strides = array<i32>} : memref<19x12xf32, #tpu.memory_space<vmem>>, vector<1x4xf32>,
    %228 = vector.extract_strided_slice %154 {offsets = [40, 0], sizes = [1, 4], strides = [1, 1]} : vector<42x4xf32> to vector<1x4xf32>
    %c17_227 = arith.constant 17 : index
    %c4_228 = arith.constant 4 : index
    %229 = vector.load %arg29[%c17_227, %c4_228] : memref<19x12xf32, #tpu.memory_space<vmem>>, vector<1x4xf32>
    tpu.vector_store %arg29[%c17_227, %c4_228], %228 {strides = array<i32>} : memref<19x12xf32, #tpu.memory_space<vmem>>, vector<1x4xf32>,
    %c0_229 = arith.constant 0 : index
    %c0_230 = arith.constant 0 : index
    %230 = vector.load %arg29[%c0_229, %c0_230] : memref<19x12xf32, #tpu.memory_space<vmem>>, vector<18x4xf32>
    %c0_231 = arith.constant 0 : index
    %c4_232 = arith.constant 4 : index
    %231 = vector.load %arg29[%c0_231, %c4_232] : memref<19x12xf32, #tpu.memory_space<vmem>>, vector<18x4xf32>
    %c0_233 = arith.constant 0 : index
    %c8_234 = arith.constant 8 : index
    %232 = vector.load %arg29[%c0_233, %c8_234] : memref<19x12xf32, #tpu.memory_space<vmem>>, vector<18x4xf32>
    %c1_235 = arith.constant 1 : index
    %c0_236 = arith.constant 0 : index
    %233 = vector.load %arg29[%c1_235, %c0_236] : memref<19x12xf32, #tpu.memory_space<vmem>>, vector<18x4xf32>
    %c1_237 = arith.constant 1 : index
    %c4_238 = arith.constant 4 : index
    %234 = vector.load %arg29[%c1_237, %c4_238] : memref<19x12xf32, #tpu.memory_space<vmem>>, vector<18x4xf32>
    %235 = tpu.concatenate %230, %231, %232, %233, %234 in 1 : vector<18x4xf32>, vector<18x4xf32>, vector<18x4xf32>, vector<18x4xf32>, vector<18x4xf32> -> vector<18x20xf32>
    %c0_239 = arith.constant 0 : index
    %c0_240 = arith.constant 0 : index
    %236 = vector.load %arg7[%c0_239, %c0_240] : memref<20x8xf32, #tpu.memory_space<vmem>>, vector<20x8xf32>
    %cst_241 = arith.constant dense<0.000000e+00> : vector<18x8xf32>
    %237 = tpu.matmul %235, %236, %cst_241 {dimension_numbers = #tpu.dot_dimension_numbers<[1], [0], [0], [1], [0, 0, 1, 1], [], []>} : vector<18x20xf32>, vector<20x8xf32>, vector<18x8xf32> -> vector<18x8xf32>
    %c0_242 = arith.constant 0 : index
    %c0_243 = arith.constant 0 : index
    %238 = vector.load %arg15[%c0_242, %c0_243] : memref<1x8xf32, #tpu.memory_space<vmem>>, vector<1x8xf32>
    %239 = vector.broadcast %238 : vector<1x8xf32> to vector<18x8xf32>
    %240 = arith.addf %237, %239 : vector<18x8xf32>
    %cst_244 = arith.constant 1.000000e-01 : f32
    %241 = vector.broadcast %cst_244 : f32 to vector<18x8xf32>
    %242 = arith.mulf %241, %240 : vector<18x8xf32>
    %243 = arith.maximumf %240, %242 : vector<18x8xf32>
    %c0_245 = arith.constant 0 : index
    %c0_246 = arith.constant 0 : index
    %244 = vector.load %arg23[%c0_245, %c0_246] : memref<18x8xf32, #tpu.memory_space<vmem>>, vector<18x8xf32>
    tpu.vector_store %arg23[%c0_245, %c0_246], %243 {strides = array<i32>} : memref<18x8xf32, #tpu.memory_space<vmem>>, vector<18x8xf32>,
    %cst_247 = arith.constant 0.000000e+00 : f32
    %245 = vector.broadcast %cst_247 : f32 to vector<40x8xf32>
    %c0_248 = arith.constant 0 : index
    %c0_249 = arith.constant 0 : index
    %246 = vector.load %arg30[%c0_248, %c0_249] : memref<40x8xf32, #tpu.memory_space<vmem>>, vector<40x8xf32>
    tpu.vector_store %arg30[%c0_248, %c0_249], %245 {strides = array<i32>} : memref<40x8xf32, #tpu.memory_space<vmem>>, vector<40x8xf32>,
    %247 = vector.extract_strided_slice %243 {offsets = [0, 0], sizes = [2, 8], strides = [1, 1]} : vector<18x8xf32> to vector<2x8xf32>
    %c2_250 = arith.constant 2 : index
    %c0_251 = arith.constant 0 : index
    %248 = vector.load %arg30[%c2_250, %c0_251] : memref<40x8xf32, #tpu.memory_space<vmem>>, vector<2x8xf32>
    tpu.vector_store %arg30[%c2_250, %c0_251], %247 {strides = array<i32>} : memref<40x8xf32, #tpu.memory_space<vmem>>, vector<2x8xf32>,
    %249 = vector.extract_strided_slice %243 {offsets = [3, 0], sizes = [2, 8], strides = [1, 1]} : vector<18x8xf32> to vector<2x8xf32>
    %c8_252 = arith.constant 8 : index
    %c0_253 = arith.constant 0 : index
    %250 = vector.load %arg30[%c8_252, %c0_253] : memref<40x8xf32, #tpu.memory_space<vmem>>, vector<2x8xf32>
    tpu.vector_store %arg30[%c8_252, %c0_253], %249 {strides = array<i32>} : memref<40x8xf32, #tpu.memory_space<vmem>>, vector<2x8xf32>,
    %251 = vector.extract_strided_slice %243 {offsets = [6, 0], sizes = [2, 8], strides = [1, 1]} : vector<18x8xf32> to vector<2x8xf32>
    %c14_254 = arith.constant 14 : index
    %c0_255 = arith.constant 0 : index
    %252 = vector.load %arg30[%c14_254, %c0_255] : memref<40x8xf32, #tpu.memory_space<vmem>>, vector<2x8xf32>
    tpu.vector_store %arg30[%c14_254, %c0_255], %251 {strides = array<i32>} : memref<40x8xf32, #tpu.memory_space<vmem>>, vector<2x8xf32>,
    %253 = vector.extract_strided_slice %243 {offsets = [9, 0], sizes = [2, 8], strides = [1, 1]} : vector<18x8xf32> to vector<2x8xf32>
    %c20 = arith.constant 20 : index
    %c0_256 = arith.constant 0 : index
    %254 = vector.load %arg30[%c20, %c0_256] : memref<40x8xf32, #tpu.memory_space<vmem>>, vector<2x8xf32>
    tpu.vector_store %arg30[%c20, %c0_256], %253 {strides = array<i32>} : memref<40x8xf32, #tpu.memory_space<vmem>>, vector<2x8xf32>,
    %255 = vector.extract_strided_slice %243 {offsets = [12, 0], sizes = [2, 8], strides = [1, 1]} : vector<18x8xf32> to vector<2x8xf32>
    %c26 = arith.constant 26 : index
    %c0_257 = arith.constant 0 : index
    %256 = vector.load %arg30[%c26, %c0_257] : memref<40x8xf32, #tpu.memory_space<vmem>>, vector<2x8xf32>
    tpu.vector_store %arg30[%c26, %c0_257], %255 {strides = array<i32>} : memref<40x8xf32, #tpu.memory_space<vmem>>, vector<2x8xf32>,
    %257 = vector.extract_strided_slice %243 {offsets = [15, 0], sizes = [2, 8], strides = [1, 1]} : vector<18x8xf32> to vector<2x8xf32>
    %c32 = arith.constant 32 : index
    %c0_258 = arith.constant 0 : index
    %258 = vector.load %arg30[%c32, %c0_258] : memref<40x8xf32, #tpu.memory_space<vmem>>, vector<2x8xf32>
    tpu.vector_store %arg30[%c32, %c0_258], %257 {strides = array<i32>} : memref<40x8xf32, #tpu.memory_space<vmem>>, vector<2x8xf32>,
    %c0_259 = arith.constant 0 : index
    %c0_260 = arith.constant 0 : index
    %259 = vector.load %arg30[%c0_259, %c0_260] : memref<40x8xf32, #tpu.memory_space<vmem>>, vector<36x8xf32>
    %c1_261 = arith.constant 1 : index
    %c0_262 = arith.constant 0 : index
    %260 = vector.load %arg30[%c1_261, %c0_262] : memref<40x8xf32, #tpu.memory_space<vmem>>, vector<36x8xf32>
    %c2_263 = arith.constant 2 : index
    %c0_264 = arith.constant 0 : index
    %261 = vector.load %arg30[%c2_263, %c0_264] : memref<40x8xf32, #tpu.memory_space<vmem>>, vector<36x8xf32>
    %c3_265 = arith.constant 3 : index
    %c0_266 = arith.constant 0 : index
    %262 = vector.load %arg30[%c3_265, %c0_266] : memref<40x8xf32, #tpu.memory_space<vmem>>, vector<36x8xf32>
    %c4_267 = arith.constant 4 : index
    %c0_268 = arith.constant 0 : index
    %263 = vector.load %arg30[%c4_267, %c0_268] : memref<40x8xf32, #tpu.memory_space<vmem>>, vector<36x8xf32>
    %264 = tpu.concatenate %259, %260, %261, %262, %263 in 1 : vector<36x8xf32>, vector<36x8xf32>, vector<36x8xf32>, vector<36x8xf32>, vector<36x8xf32> -> vector<36x40xf32>
    %c0_269 = arith.constant 0 : index
    %c0_270 = arith.constant 0 : index
    %265 = vector.load %arg8[%c0_269, %c0_270] : memref<40x16xf32, #tpu.memory_space<vmem>>, vector<40x16xf32>
    %cst_271 = arith.constant dense<0.000000e+00> : vector<36x16xf32>
    %266 = tpu.matmul %264, %265, %cst_271 {dimension_numbers = #tpu.dot_dimension_numbers<[1], [0], [0], [1], [0, 0, 1, 1], [], []>} : vector<36x40xf32>, vector<40x16xf32>, vector<36x16xf32> -> vector<36x16xf32>
    %c0_272 = arith.constant 0 : index
    %c0_273 = arith.constant 0 : index
    %267 = vector.load %arg16[%c0_272, %c0_273] : memref<1x16xf32, #tpu.memory_space<vmem>>, vector<1x16xf32>
    %268 = vector.broadcast %267 : vector<1x16xf32> to vector<36x16xf32>
    %269 = arith.addf %266, %268 : vector<36x16xf32>
    %cst_274 = arith.constant 1.000000e-01 : f32
    %270 = vector.broadcast %cst_274 : f32 to vector<36x16xf32>
    %271 = arith.mulf %270, %269 : vector<36x16xf32>
    %272 = arith.maximumf %269, %271 : vector<36x16xf32>
    %c0_275 = arith.constant 0 : index
    %c0_276 = arith.constant 0 : index
    %273 = vector.load %arg24[%c0_275, %c0_276] : memref<36x16xf32, #tpu.memory_space<vmem>>, vector<36x16xf32>
    tpu.vector_store %arg24[%c0_275, %c0_276], %272 {strides = array<i32>} : memref<36x16xf32, #tpu.memory_space<vmem>>, vector<36x16xf32>,
    %cst_277 = arith.constant 0.000000e+00 : f32
    %274 = vector.broadcast %cst_277 : f32 to vector<26x16xf32>
    %c0_278 = arith.constant 0 : index
    %c0_279 = arith.constant 0 : index
    %275 = vector.load %arg31[%c0_278, %c0_279] : memref<26x16xf32, #tpu.memory_space<vmem>>, vector<26x16xf32>
    tpu.vector_store %arg31[%c0_278, %c0_279], %274 {strides = array<i32>} : memref<26x16xf32, #tpu.memory_space<vmem>>, vector<26x16xf32>,
    %276 = vector.extract_strided_slice %272 {offsets = [0, 0], sizes = [2, 16], strides = [1, 1]} : vector<36x16xf32> to vector<2x16xf32>
    %c1_280 = arith.constant 1 : index
    %c0_281 = arith.constant 0 : index
    %277 = vector.load %arg31[%c1_280, %c0_281] : memref<26x16xf32, #tpu.memory_space<vmem>>, vector<2x16xf32>
    tpu.vector_store %arg31[%c1_280, %c0_281], %276 {strides = array<i32>} : memref<26x16xf32, #tpu.memory_space<vmem>>, vector<2x16xf32>,
    %278 = vector.extract_strided_slice %272 {offsets = [6, 0], sizes = [2, 16], strides = [1, 1]} : vector<36x16xf32> to vector<2x16xf32>
    %c5_282 = arith.constant 5 : index
    %c0_283 = arith.constant 0 : index
    %279 = vector.load %arg31[%c5_282, %c0_283] : memref<26x16xf32, #tpu.memory_space<vmem>>, vector<2x16xf32>
    tpu.vector_store %arg31[%c5_282, %c0_283], %278 {strides = array<i32>} : memref<26x16xf32, #tpu.memory_space<vmem>>, vector<2x16xf32>,
    %280 = vector.extract_strided_slice %272 {offsets = [12, 0], sizes = [2, 16], strides = [1, 1]} : vector<36x16xf32> to vector<2x16xf32>
    %c9_284 = arith.constant 9 : index
    %c0_285 = arith.constant 0 : index
    %281 = vector.load %arg31[%c9_284, %c0_285] : memref<26x16xf32, #tpu.memory_space<vmem>>, vector<2x16xf32>
    tpu.vector_store %arg31[%c9_284, %c0_285], %280 {strides = array<i32>} : memref<26x16xf32, #tpu.memory_space<vmem>>, vector<2x16xf32>,
    %282 = vector.extract_strided_slice %272 {offsets = [18, 0], sizes = [2, 16], strides = [1, 1]} : vector<36x16xf32> to vector<2x16xf32>
    %c13_286 = arith.constant 13 : index
    %c0_287 = arith.constant 0 : index
    %283 = vector.load %arg31[%c13_286, %c0_287] : memref<26x16xf32, #tpu.memory_space<vmem>>, vector<2x16xf32>
    tpu.vector_store %arg31[%c13_286, %c0_287], %282 {strides = array<i32>} : memref<26x16xf32, #tpu.memory_space<vmem>>, vector<2x16xf32>,
    %284 = vector.extract_strided_slice %272 {offsets = [24, 0], sizes = [2, 16], strides = [1, 1]} : vector<36x16xf32> to vector<2x16xf32>
    %c17_288 = arith.constant 17 : index
    %c0_289 = arith.constant 0 : index
    %285 = vector.load %arg31[%c17_288, %c0_289] : memref<26x16xf32, #tpu.memory_space<vmem>>, vector<2x16xf32>
    tpu.vector_store %arg31[%c17_288, %c0_289], %284 {strides = array<i32>} : memref<26x16xf32, #tpu.memory_space<vmem>>, vector<2x16xf32>,
    %286 = vector.extract_strided_slice %272 {offsets = [30, 0], sizes = [2, 16], strides = [1, 1]} : vector<36x16xf32> to vector<2x16xf32>
    %c21 = arith.constant 21 : index
    %c0_290 = arith.constant 0 : index
    %287 = vector.load %arg31[%c21, %c0_290] : memref<26x16xf32, #tpu.memory_space<vmem>>, vector<2x16xf32>
    tpu.vector_store %arg31[%c21, %c0_290], %286 {strides = array<i32>} : memref<26x16xf32, #tpu.memory_space<vmem>>, vector<2x16xf32>,
    %c0_291 = arith.constant 0 : index
    %c0_292 = arith.constant 0 : index
    %288 = vector.load %arg31[%c0_291, %c0_292] : memref<26x16xf32, #tpu.memory_space<vmem>>, vector<24x16xf32>
    %c1_293 = arith.constant 1 : index
    %c0_294 = arith.constant 0 : index
    %289 = vector.load %arg31[%c1_293, %c0_294] : memref<26x16xf32, #tpu.memory_space<vmem>>, vector<24x16xf32>
    %c2_295 = arith.constant 2 : index
    %c0_296 = arith.constant 0 : index
    %290 = vector.load %arg31[%c2_295, %c0_296] : memref<26x16xf32, #tpu.memory_space<vmem>>, vector<24x16xf32>
    %291 = tpu.concatenate %288, %289, %290 in 1 : vector<24x16xf32>, vector<24x16xf32>, vector<24x16xf32> -> vector<24x48xf32>
    %c0_297 = arith.constant 0 : index
    %c0_298 = arith.constant 0 : index
    %292 = vector.load %arg9[%c0_297, %c0_298] : memref<48x1xf32, #tpu.memory_space<vmem>>, vector<48x1xf32>
    %cst_299 = arith.constant dense<0.000000e+00> : vector<24x1xf32>
    %293 = tpu.matmul %291, %292, %cst_299 {dimension_numbers = #tpu.dot_dimension_numbers<[1], [0], [0], [1], [0, 0, 1, 1], [], []>} : vector<24x48xf32>, vector<48x1xf32>, vector<24x1xf32> -> vector<24x1xf32>
    %c0_300 = arith.constant 0 : index
    %c0_301 = arith.constant 0 : index
    %294 = vector.load %arg17[%c0_300, %c0_301] : memref<1x1xf32, #tpu.memory_space<vmem>>, vector<1x1xf32>
    %295 = vector.broadcast %294 : vector<1x1xf32> to vector<24x1xf32>
    %296 = arith.addf %293, %295 : vector<24x1xf32>
    %c0_302 = arith.constant 0 : index
    %c0_303 = arith.constant 0 : index
    %297 = vector.load %arg25[%c0_302, %c0_303] : memref<24x1xf32, #tpu.memory_space<vmem>>, vector<24x1xf32>
    tpu.vector_store %arg25[%c0_302, %c0_303], %296 {strides = array<i32>} : memref<24x1xf32, #tpu.memory_space<vmem>>, vector<24x1xf32>,
    return
  }
}

</mosaic_0001>

<bundles_post_ra>
// kernel: tpu_custom_call.1
= control target key start
LH: loop header
LB: loop body
LE: loop exit
PB: predicated region body
PF: predicated region fallthrough
CT: control target
= control target key end

     0   :  { %v1995_v2 = vmov 0.0   ;;  %vm144_vm0 = vcmask 1044480   ;;  %vm2866_vm1 = vmmov 0   ;;  %vm108_vm2 = vcmask 23552   ;;  %s1998_s30 = smov 4   ;;  %s2000_s27 = smov 12   ;;  %s2823_s0 = inlined_call_operand.vmem [shape: f32[37,3], index: 0, kind: input, shape index: {}]   ;;  %s2824_s2 = inlined_call_operand.vmem [shape: f32[5,4], index: 2, kind: input, shape index: {}]   ;;  %s2825_s10 = inlined_call_operand.vmem [shape: f32[1,4], index: 10, kind: input, shape index: {}]   ;;  %s2826_s18 = inlined_call_operand.vmem [shape: f32[36,4], index: 18, kind: output, shape index: {0}]   ;;  %s2827_s3 = inlined_call_operand.vmem [shape: f32[20,8], index: 3, kind: input, shape index: {}]   ;;  %s2828_s11 = inlined_call_operand.vmem [shape: f32[1,8], index: 11, kind: input, shape index: {}]   ;;  %s2829_s19 = inlined_call_operand.vmem [shape: f32[16,8], index: 19, kind: output, shape index: {1}]   ;;  %s2830_s4 = inlined_call_operand.vmem [shape: f32[40,16], index: 4, kind: input, shape index: {}]   ;;  %s2831_s6 = inlined_call_operand.vmem [shape: f32[5,4], index: 6, kind: input, shape index: {}]   ;;  %s2832_s1 = inlined_call_operand.vmem [shape: f32[43,3], index: 1, kind: input, shape index: {}]   ;;  %s2833_s12 = inlined_call_operand.vmem [shape: f32[1,16], index: 12, kind: input, shape index: {}]   ;;  %s2834_s20 = inlined_call_operand.vmem [shape: f32[28,16], index: 20, kind: output, shape index: {2}]   ;;  %s2835_s14 = inlined_call_operand.vmem [shape: f32[1,4], index: 14, kind: input, shape index: {}]   ;;  %s2836_s22 = inlined_call_operand.vmem [shape: f32[42,4], index: 22, kind: output, shape index: {4}]   ;;  %s2837_s5 = inlined_call_operand.vmem [shape: f32[48,1], index: 5, kind: input, shape index: {}]   ;;  %s2838_s13 = inlined_call_operand.<no memory space> [shape: f32[1,1], index: 13, kind: input, shape index: {}]   ;;  %s2839_s7 = inlined_call_operand.vmem [shape: f32[20,8], index: 7, kind: input, shape index: {}]   ;;  %s2840_s21 = inlined_call_operand.vmem [shape: f32[20,1], index: 21, kind: output, shape index: {3}]   ;;  %s2841_s8 = inlined_call_operand.vmem [shape: f32[40,16], index: 8, kind: input, shape index: {}]   ;;  %s2842_s15 = inlined_call_operand.vmem [shape: f32[1,8], index: 15, kind: input, shape index: {}]   ;;  %s2843_s23 = inlined_call_operand.vmem [shape: f32[18,8], index: 23, kind: output, shape index: {5}]   ;;  %s2844_s9 = inlined_call_operand.vmem [shape: f32[48,1], index: 9, kind: input, shape index: {}]   ;;  %s2845_s16 = inlined_call_operand.vmem [shape: f32[1,16], index: 16, kind: input, shape index: {}]   ;;  %s2846_s24 = inlined_call_operand.vmem [shape: f32[36,16], index: 24, kind: output, shape index: {6}]   ;;  %s2847_s17 = inlined_call_operand.<no memory space> [shape: f32[1,1], index: 17, kind: input, shape index: {}]   ;;  %s2848_s25 = inlined_call_operand.vmem [shape: f32[24,1], index: 25, kind: output, shape index: {7}]  }
   0x1   :  { %2887 = sst [smem:[#allocation10_spill]] %s2823_s0  ;;  %1851 = vmatprep.subr.mxu0 %v1995_v2  ;;  %1853 = vmatprep.mubr.msk.f32.mxu0 %vm2866_vm1, %v1995_v2  ;;  %vm2869_vm3 = vcmask 31744   ;;  %vm2868_vm4 = vcmask 39936   ;;  %vm2873_vm5 = vcmask 97280   ;;  %vm2858_vm6 = vcmask 25601  }
   0x2   :  { %2888 = sst [smem:[#allocation11_spill]] %s2824_s2  ;;  %255 = vst.msk [vmem:[#allocation2] sm:$0xff] %vm2873_vm5, %v1995_v2  ;;  %256 = vst.msk [vmem:[#allocation2 + $0x8] sm:$0xff] %vm2873_vm5, %v1995_v2  ;;  %vm2857_vm7 = vcmask 28676   ;;  %vm2859_vm8 = vcmask 31751   ;;  %vm2862_vm9 = vcmask 26626  }
   0x3   :  { %2889 = sst [smem:[#allocation12_spill]] %s2825_s10  ;;  %1065 = vst.msk [vmem:[#allocation5] sm:$0xff] %vm2873_vm5, %v1995_v2  ;;  %1066 = vst.msk [vmem:[#allocation5 + $0x8] sm:$0xff] %vm2873_vm5, %v1995_v2  ;;  %vm2856_vm10 = vcmask 29701   ;;  %s1999_s2 = smov 8   ;;  %vm2860_vm11 = vcmask 27651  }
   0x4   :  { %2890 = sst [smem:[#allocation13_spill]] %s2826_s18  ;;  %s1996_s18 = smov 3   ;;  %vm2855_vm12 = vcmask 30726   ;;  %vm2864_vm13 = vcmask 24576   ;;  %vm257_vm14 = vcmask 90112   ;;  %vm252_vm15 = vcmask 27648  }
   0x5   :  { %2891 = sst [smem:[#allocation14_spill]] %s2827_s3  ;;  %258 = vst.msk [vmem:[#allocation2 + $0x10] sm:$0x1] %vm257_vm14, %v1995_v2  ;;  %vm2861_vm14 = vcmask 59426   ;;  %s2875_s3 = smov 24  }
   0x6   :  { %2892 = sst [smem:[#allocation15_spill]] %s2828_s11 }
   0x7   :  { %2893 = sst [smem:[#allocation16_spill]] %s2829_s19 }
   0x8   :  { %2894 = sst [smem:[#allocation17_spill]] %s2830_s4 }
   0x9   :  { %2895 = sst [smem:[#allocation18_spill]] %s2831_s6  ;;  %s2003_s6 = smov 32  }
   0xa   :  { %2896 = sst [smem:[#allocation19_spill]] %s2832_s1  ;;  %s2001_s1 = smov 16  }
   0xb   :  { %s2897_s19 = sld [smem:[#allocation10_spill]] }
   0xc   :  { %s2898_s28 = sld [smem:[#allocation11_spill]] }
   0xd   :  { %s2899_s11 = sld [smem:[#allocation12_spill]] }
   0xe   :  { %s2900_s10 = sld [smem:[#allocation13_spill]] }
   0xf   :  { %s2901_s29 = sld [smem:[#allocation14_spill]] }
  0x10   :  { %s2905_s4 = sld [smem:[#allocation18_spill]] }
  0x11   :  { %v76_v0 = vld [vmem:[%s2897_s19 + $0x1] sm:$0xff]  ;;  %v78_v1 = vld [vmem:[%s2897_s19 + $0x11] sm:$0xff]  ;;  %v77_v3 = vld [vmem:[%s2897_s19 + $0x9] sm:$0xff] }
  0x12   :  { %86 = vrot.lane.b32.xlu0 %v76_v0, %s1996_s18  ;;  %90 = vrot.lane.b32.xlu1 %v78_v1, %s1996_s18  ;;  %v79_v4 = vld [vmem:[%s2897_s19 + $0x19] sm:$0xff]  ;;  %v80_v6 = vld [vmem:[%s2897_s19 + $0x21] sm:$0xf] }
  0x13   :  { %v120_v5 = vld [vmem:[%s2898_s28] sm:$0x1f]  ;;  %v72_v12 = vld [vmem:[%s2897_s19 + $0x8] sm:$0xff]  ;;  %v73_v13 = vld [vmem:[%s2897_s19 + $0x10] sm:$0xff] }
  0x14   :  { %1852 = vmatpush3.msk.msra.mxu0 %vm144_vm0, %v120_v5  ;;  %v71_v7 = vld [vmem:[%s2897_s19] sm:$0xff]  ;;  %v74_v19 = vld [vmem:[%s2897_s19 + $0x18] sm:$0xff] }
  0x15   :  { %1893 = vmatprep.subr.mxu0 %v1995_v2  ;;  %v75_v23 = vld [vmem:[%s2897_s19 + $0x20] sm:$0xf]  ;;  %v371_v56 = vld [vmem:[%s2901_s29 + $0x10] sm:$0xf]  ;;  %v370_v57 = vld [vmem:[%s2901_s29 + $0x8] sm:$0xff]  ;;  %s2906_s19 = sld [smem:[#allocation19_spill]] }
  0x16   :  { %88 = vrot.lane.b32.xlu0 %v77_v3, %s1996_s18  ;;  %92 = vrot.lane.b32.xlu1 %v79_v4, %s1996_s18  ;;  %v1747_v27 = vld [vmem:[%s2899_s11] ss:$0 sm:$0xff]  ;;  %s2902_s11 = sld [smem:[#allocation15_spill]] }
  0x17   :  { %v369_v62 = vld [vmem:[%s2901_s29] sm:$0xff] }
  0x1a   :  { %94 = vrot.lane.b32.xlu0 %v80_v6, %s1996_s18 }
  0x84   :  { %v87_v8 = vpop.permute.xlu0 %86  ;;  %v91_v9 = vpop.permute.xlu1 %90 }
  0x85   :  { %v109_v10 = vsel %vm108_vm2, %v71_v7, %v87_v8  ;;  %v111_v16 = vsel %vm108_vm2, %v73_v13, %v91_v9 }
  0x86   :  { %v115_v11 = vsel %vm2869_vm3, %v109_v10, %v87_v8  ;;  %v117_v20 = vsel %vm2869_vm3, %v111_v16, %v91_v9 }
  0x87   :  { %1854 = vmatmul.mubr.msk.f32.vlgmr.msra.gmra.mxu0 %vm2868_vm4, %v115_v11 }
  0x88   :  { %v89_v14 = vpop.permute.xlu0 %88  ;;  %1856 = vmatprep.mubr.msk.f32.mxu0 %vm2866_vm1, %v1995_v2  ;;  %v93_v18 = vpop.permute.xlu1 %92 }
  0x89   :  { %v110_v15 = vsel %vm108_vm2, %v72_v12, %v89_v14  ;;  %v112_v21 = vsel %vm108_vm2, %v74_v19, %v93_v18 }
  0x8a   :  { %v116_v17 = vsel %vm2869_vm3, %v110_v15, %v89_v14  ;;  %v118_v24 = vsel %vm2869_vm3, %v112_v21, %v93_v18  ;;  %v1754_v15 = vld [vmem:[%s2902_s11] ss:$0 sm:$0xff]  ;;  %s2904_s11 = sld [smem:[#allocation17_spill]] }
  0x8b   :  { %1857 = vmatmul.mubr.msk.f32.gmra.mxu0 %vm2868_vm4, %v116_v17 }
  0x8c   :  { %1859 = vmatprep.mubr.msk.f32.mxu0 %vm2866_vm1, %v1995_v2  ;;  %v95_v22 = vpop.permute.xlu0 %94 }
  0x8d   :  { %v113_v25 = vsel %vm108_vm2, %v75_v23, %v95_v22 }
  0x8e   :  { %v119_v26 = vsel %vm2869_vm3, %v113_v25, %v95_v22 }
  0x8f   :  { %1860 = vmatmul.mubr.msk.f32.gmra.mxu0 %vm2868_vm4, %v117_v20 }
  0x90   :  { %1862 = vmatprep.mubr.msk.f32.mxu0 %vm2866_vm1, %v1995_v2 }
  0x93   :  { %1863 = vmatmul.mubr.msk.f32.gmra.mxu0 %vm2868_vm4, %v118_v24 }
  0x94   :  { %1865 = vmatprep.mubr.msk.f32.mxu0 %vm2866_vm1, %v1995_v2 }
  0x97   :  { %1866 = vmatmul.mubr.msk.f32.gmra.mxu0 %vm2868_vm4, %v119_v26  ;;  %vm2884_vm4 = vcmask 64551  }
  0x98   :  { %1905 = vmatprep.mubr.msk.f32.mxu0 %vm2866_vm1, %v1995_v2  ;;  %vm316_vm1 = vcmask 61476  }
 0x147   :  { %v214_v28 = vpop.f32.mrf.mxu0 }
 0x148   :  { %v215_v29 = vadd.f32 %v1747_v27, %v214_v28  ;;  %v587_v28 = vld [vmem:[%s2904_s11 + $0x20] sm:$0xff] }
 0x149   :  { %v1855_v30 = vpop.f32.mrf.mxu0 }
 0x14a   :  { %v238_v31 = vmul.f32 0.1, %v215_v29 }
 0x14b   :  { %v219_v32 = vpop.f32.mrf.mxu0 }
 0x14c   :  { %v243_v33 = vmax.f32 %v215_v29, %v238_v31  ;;  %v220_v34 = vadd.f32 %v1747_v27, %v219_v32  ;;  %v586_v29 = vld [vmem:[%s2904_s11 + $0x18] sm:$0xff]  ;;  %v585_v32 = vld [vmem:[%s2904_s11 + $0x10] sm:$0xff] }
 0x14d   :  { %v1858_v35 = vpop.f32.mrf.mxu0 }
 0x14e   :  { %v239_v36 = vmul.f32 0.1, %v220_v34  ;;  %248 = vst.msk [vmem:[%s2900_s10] sm:$0xff] %vm2869_vm3, %v243_v33  ;;  %267 = vrot.lane.b32.xlu1 %v243_v33, %s1998_s30  ;;  %v584_v35 = vld [vmem:[%s2904_s11 + $0x8] sm:$0xff] }
 0x14f   :  { %266 = vst.msk [vmem:[#allocation2] sm:$0x2] %vm2858_vm6, %v243_v33  ;;  %v224_v37 = vpop.f32.mrf.mxu0 }
 0x150   :  { %275 = vst.msk [vmem:[#allocation2 - $0x2] sm:$0x10] %vm2857_vm7, %v243_v33  ;;  %v244_v38 = vmax.f32 %v220_v34, %v239_v36  ;;  %v225_v39 = vadd.f32 %v1747_v27, %v224_v37  ;;  %v583_v36 = vld [vmem:[%s2904_s11] sm:$0xff] }
 0x151   :  { %281 = vst.msk [vmem:[#allocation2 - $0x4] sm:$0x80] %vm2859_vm8, %v243_v33  ;;  %v1861_v40 = vpop.f32.mrf.mxu0 }
 0x152   :  { %249 = vst.msk [vmem:[%s2900_s10 + $0x8] sm:$0xff] %vm2869_vm3, %v244_v38  ;;  %v240_v41 = vmul.f32 0.1, %v225_v39  ;;  %260 = vrot.lane.b32.xlu1 %v243_v33, %s1999_s2  ;;  %290 = vrot.lane.b32.xlu0 %v244_v38, %s1998_s30 }
 0x153   :  { %289 = vst.msk [vmem:[#allocation2 + $0x3] sm:$0x4] %vm2862_vm9, %v244_v38  ;;  %v229_v42 = vpop.f32.mrf.mxu0 }
 0x154   :  { %298 = vst.msk [vmem:[#allocation2 + $0x1] sm:$0x20] %vm2856_vm10, %v244_v38  ;;  %v245_v43 = vmax.f32 %v225_v39, %v240_v41  ;;  %v230_v44 = vadd.f32 %v1747_v27, %v229_v42  ;;  %vm263_vm10 = vcmask 90176   ;;  %v2363_v39 = vld [vmem:[%s2905_s4] sm:$0x1f]  ;;  %v875_v42 = vld [vmem:[%s2906_s19 + $0x9] sm:$0xff] }
 0x155   :  { %v1864_v45 = vpop.f32.mrf.mxu0 }
 0x156   :  { %250 = vst.msk [vmem:[%s2900_s10 + $0x10] sm:$0xff] %vm2869_vm3, %v245_v43  ;;  %v241_v46 = vmul.f32 0.1, %v230_v44  ;;  %283 = vrot.lane.b32.xlu0 %v244_v38, %s1999_s2  ;;  %306 = vrot.lane.b32.xlu1 %v245_v43, %s1999_s2 }
 0x157   :  { %312 = vst.msk [vmem:[#allocation2 + $0x6] sm:$0x8] %vm2860_vm11, %v245_v43  ;;  %v234_v47 = vpop.f32.mrf.mxu0  ;;  %vm366_vm11 = vcmask 130048  }
 0x158   :  { %321 = vst.msk [vmem:[#allocation2 + $0x4] sm:$0x40] %vm2855_vm12, %v245_v43  ;;  %v246_v48 = vmax.f32 %v230_v44, %v241_v46  ;;  %v235_v49 = vadd.f32 %v1747_v27, %v234_v47  ;;  %vm276_vm12 = vcmask 62501   ;;  %v877_v44 = vld [vmem:[%s2906_s19 + $0x19] sm:$0xff]  ;;  %v874_v46 = vld [vmem:[%s2906_s19 + $0x1] sm:$0xff] }
 0x159   :  { %304 = vst.msk [vmem:[#allocation2 + $0x7] sm:$0x1] %vm2864_vm13, %v245_v43  ;;  %v1867_v50 = vpop.f32.mrf.mxu0  ;;  %vm2874_vm13 = vcmask 92226   ;;  %v879_v47 = vld [vmem:[%s2906_s19 + $0x29] sm:$0x3] }
 0x15a   :  { %251 = vst.msk [vmem:[%s2900_s10 + $0x18] sm:$0xff] %vm2869_vm3, %v246_v48  ;;  %v242_v51 = vmul.f32 0.1, %v235_v49  ;;  %313 = vrot.lane.b32.xlu0 %v245_v43, %s1998_s30  ;;  %332 = vrot.lane.b32.xlu1 %v246_v48, %s1998_s30  ;;  %vm2882_vm3 = vcmask 95301  }
 0x15b   :  { %329 = vst.msk [vmem:[#allocation2 + $0xa] sm:$0x2] %vm2858_vm6, %v246_v48  ;;  %vm2872_vm6 = vcmask 96326  }
 0x15c   :  { %331 = vst.msk [vmem:[#allocation2 + $0x9] sm:$0x10] %vm2857_vm7, %v246_v48  ;;  %v247_v52 = vmax.f32 %v235_v49, %v242_v51  ;;  %vm272_vm7 = vcmask 93251   ;;  %v878_v49 = vld [vmem:[%s2906_s19 + $0x21] sm:$0xff] }
 0x15d   :  { %337 = vst.msk [vmem:[#allocation2 + $0x7] sm:$0x80] %vm2859_vm8, %v246_v48  ;;  %vm2863_vm8 = vcmask 60451  }
 0x15e   :  { %253 = vst.msk [vmem:[%s2900_s10 + $0x20] sm:$0xf] %vm252_vm15, %v247_v52  ;;  %325 = vrot.lane.b32.xlu1 %v246_v48, %s1999_s2  ;;  %339 = vrot.lane.b32.xlu0 %v247_v52, %s1998_s30  ;;  %vm2865_vm15 = vcmask 63526   ;;  %s2903_s10 = sld [smem:[#allocation16_spill]]  ;;  %v876_v48 = vld [vmem:[%s2906_s19 + $0x11] sm:$0xff] }
 0x15f   :  { %348 = vst.msk [vmem:[#allocation2 + $0xd] sm:$0x4] %vm2862_vm9, %v247_v52  ;;  %vm2870_vm9 = vcmask 94276  }
 0x160   :  { %706 = vst.msk [vmem:[#allocation4] sm:$0xff] %vm366_vm11, %v1995_v2  ;;  %707 = vst.msk [vmem:[#allocation4 + $0x8] sm:$0xff] %vm366_vm11, %v1995_v2 }
 0x161   :  { %1559 = vst.msk [vmem:[#allocation7] sm:$0xff] %vm366_vm11, %v1995_v2  ;;  %1560 = vst.msk [vmem:[#allocation7 + $0x8] sm:$0xff] %vm366_vm11, %v1995_v2 }
 0x162   :  { %344 = vrot.lane.b32.xlu0 %v247_v52, %s1999_s2  ;;  %1561 = vst.msk [vmem:[#allocation7 + $0x10] sm:$0xff] %vm366_vm11, %v1995_v2 }
 0x1c0   :  { %v268_v53 = vpop.permute.xlu1 %267 }
 0x1c1   :  { %271 = vst.msk [vmem:[#allocation2 - $0x1] sm:$0x4] %vm2861_vm14, %v268_v53  ;;  %vm2883_vm14 = vcmask 91201  }
 0x1c2   :  { %277 = vst.msk [vmem:[#allocation2 - $0x3] sm:$0x20] %vm276_vm12, %v268_v53 }
 0x1c4   :  { %v261_v54 = vpop.permute.xlu1 %260  ;;  %v291_v55 = vpop.permute.xlu0 %290 }
 0x1c5   :  { %264 = vst.msk [vmem:[#allocation2] sm:$0x1] %vm263_vm10, %v261_v54 }
 0x1c6   :  { %273 = vst.msk [vmem:[#allocation2 - $0x2] sm:$0x8] %vm272_vm7, %v261_v54 }
 0x1c7   :  { %279 = vst.msk [vmem:[#allocation2 - $0x4] sm:$0x40] %vm2872_vm6, %v261_v54 }
 0x1c8   :  { %294 = vst.msk [vmem:[#allocation2 + $0x2] sm:$0x8] %vm2863_vm8, %v291_v55  ;;  %vm301_vm8 = vcmask 97351   ;;  %v284_v58 = vpop.permute.xlu0 %283  ;;  %v307_v59 = vpop.permute.xlu1 %306 }
 0x1c9   :  { %300 = vst.msk [vmem:[#allocation2] sm:$0x40] %vm2865_vm15, %v291_v55  ;;  %vm2871_vm15 = vcmask 1043456  }
 0x1ca   :  { %1868 = vmatprep.subr.msk.mxu1 %vm2871_vm15, %v371_v56  ;;  %287 = vst.msk [vmem:[#allocation2 + $0x3] sm:$0x2] %vm2883_vm14, %v284_v58 }
 0x1cb   :  { %296 = vst.msk [vmem:[#allocation2 + $0x1] sm:$0x10] %vm2870_vm9, %v284_v58  ;;  %1869 = vmatpush3.msk.msra.mxu1 %vm2871_vm15, %v371_v56  ;;  %vm342_vm9 = vcmask 57376   ;;  %vm2879_vm15 = vcmask 64512  }
 0x1cc   :  { %302 = vst.msk [vmem:[#allocation2 - $0x1] sm:$0x80] %vm301_vm8, %v284_v58  ;;  %1870 = vmatprep.subr.mxu1 %v370_v57  ;;  %v314_v60 = vpop.permute.xlu0 %313  ;;  %v333_v61 = vpop.permute.xlu1 %332 }
 0x1cd   :  { %310 = vst.msk [vmem:[#allocation2 + $0x6] sm:$0x4] %vm2874_vm13, %v307_v59  ;;  %1871 = vmatpush3.msra.mxu1 %v370_v57  ;;  %vm477_vm13 = vcmask 63492  }
 0x1ce   :  { %317 = vst.msk [vmem:[#allocation2 + $0x5] sm:$0x10] %vm316_vm1, %v314_v60  ;;  %1872 = vmatprep.subr.mxu1 %v369_v62 }
 0x1cf   :  { %323 = vst.msk [vmem:[#allocation2 + $0x3] sm:$0x80] %vm2884_vm4, %v314_v60  ;;  %1873 = vmatpush3.msra.mxu1 %v369_v62  ;;  %vm714_vm4 = vcmask 123904  }
 0x1d0   :  { %335 = vst.msk [vmem:[#allocation2 + $0x8] sm:$0x20] %vm276_vm12, %v333_v61  ;;  %v326_v63 = vpop.permute.xlu1 %325  ;;  %v340_v0 = vpop.permute.xlu0 %339  ;;  %1877 = vmatprep.subr.mxu1 %v587_v28 }
 0x1d1   :  { %319 = vst.msk [vmem:[#allocation2 + $0x4] sm:$0x20] %vm2882_vm3, %v307_v59 }
 0x1d2   :  { %328 = vst.msk [vmem:[#allocation2 + $0xa] sm:$0x1] %vm263_vm10, %v326_v63 }
 0x1d3   :  { %330 = vst.msk [vmem:[#allocation2 + $0x9] sm:$0x8] %vm272_vm7, %v326_v63  ;;  %v349_v5 = vld [vmem:[#allocation2] sm:$0xff] }
 0x1d4   :  { %v351_v1 = vld [vmem:[#allocation2 + $0x1] sm:$0xff]  ;;  %336 = vst.msk [vmem:[#allocation2 + $0x7] sm:$0x40] %vm2872_vm6, %v326_v63  ;;  %v345_v3 = vpop.permute.xlu0 %344  ;;  %vm2877_vm6 = vcmask 162816  }
 0x1d5   :  { %343 = vst.msk [vmem:[#allocation2 + $0xe] sm:$0x1] %vm342_vm9, %v340_v0  ;;  %355 = vrot.lane.b32.xlu1 %v351_v1, %s2000_s27 }
 0x1d6   :  { %473 = vst.msk [vmem:[#allocation3 + $0x10] sm:$0xff] %vm2879_vm15, %v1995_v2  ;;  %471 = vst.msk [vmem:[#allocation3] sm:$0xff] %vm2879_vm15, %v1995_v2 }
 0x1d7   :  { %472 = vst.msk [vmem:[#allocation3 + $0x8] sm:$0xff] %vm2879_vm15, %v1995_v2  ;;  %474 = vst.msk [vmem:[#allocation3 + $0x18] sm:$0xff] %vm2879_vm15, %v1995_v2 }
 0x1d8   :  { %1284 = vst.msk [vmem:[#allocation6] sm:$0xff] %vm2879_vm15, %v1995_v2  ;;  %1285 = vst.msk [vmem:[#allocation6 + $0x8] sm:$0xff] %vm2879_vm15, %v1995_v2 }
 0x1d9   :  { %1286 = vst.msk [vmem:[#allocation6 + $0x10] sm:$0xff] %vm2879_vm15, %v1995_v2  ;;  %1287 = vst.msk [vmem:[#allocation6 + $0x18] sm:$0xff] %vm2879_vm15, %v1995_v2 }
 0x1da   :  { %1288 = vst.msk [vmem:[#allocation6 + $0x20] sm:$0xff] %vm2879_vm15, %v1995_v2 }
 0x1db   :  { %347 = vst.msk [vmem:[#allocation2 + $0xd] sm:$0x2] %vm2883_vm14, %v345_v3  ;;  %vm2917_vm14 = vmmov 0  }
 0x1dc   :  { %1562 = vst.msk [vmem:[#allocation7 + $0x18] sm:$0x3] %vm714_vm4, %v1995_v2 }
 0x1de   :  { %v492_v13 = vld [vmem:[#allocation3 + $0x1a] sm:$0xf] }
 0x1df   :  { %v496_v14 = vld [vmem:[#allocation3 + $0x1b] sm:$0xf] }
 0x1e0   :  { %v500_v40 = vld [vmem:[#allocation3 + $0x1c] sm:$0xf] }
 0x1e2   :  { %v352_v4 = vld [vmem:[#allocation2 + $0x9] sm:$0xff] }
 0x1e3   :  { %357 = vrot.lane.b32.xlu0 %v352_v4, %s2000_s27  ;;  %v350_v10 = vld [vmem:[#allocation2 + $0x8] sm:$0xff] }
 0x1e7   :  { %527 = vrot.lane.b32.xlu0 %v492_v13, %s2001_s1 }
 0x1eb   :  { %543 = vrot.lane.b32.xlu0 %v496_v14, %s2875_s3 }
 0x247   :  { %v356_v6 = vpop.permute.xlu1 %355 }
 0x248   :  { %v364_v7 = vsel %vm2873_vm5, %v349_v5, %v356_v6 }
 0x249   :  { %v367_v8 = vsel %vm366_vm11, %v364_v7, %v356_v6 }
 0x24a   :  { %1874 = vmatprep.mubr.msk.f32.mxu1 %vm2877_vm6, %v367_v8 }
 0x255   :  { %v358_v9 = vpop.permute.xlu0 %357 }
 0x256   :  { %v365_v11 = vsel %vm2873_vm5, %v350_v10, %v358_v9  ;;  %vm475_vm5 = vcmask 59392  }
 0x257   :  { %v368_v12 = vsel %vm366_vm11, %v365_v11, %v358_v9 }
 0x258   :  { %1875 = vmatmul.mubr.msk.f32.vlgmr.msra.gmra.mxu1 %vm2877_vm6, %v368_v12  ;;  %vm2880_vm6 = vcmask 326656  }
 0x259   :  { %1878 = vmatpush3.msra.mxu1 %v587_v28  ;;  %v528_v50 = vpop.permute.xlu0 %527 }
 0x25a   :  { %1879 = vmatprep.subr.mxu1 %v586_v29 }
 0x25b   :  { %1880 = vmatpush3.msra.mxu1 %v586_v29 }
 0x25c   :  { %1881 = vmatprep.subr.mxu1 %v585_v32 }
 0x25d   :  { %1882 = vmatpush3.msra.mxu1 %v585_v32  ;;  %v544_v51 = vpop.permute.xlu0 %543 }
 0x25e   :  { %1883 = vmatprep.subr.mxu1 %v584_v35 }
 0x25f   :  { %1884 = vmatpush3.msra.mxu1 %v584_v35  ;;  %v873_v35 = vld [vmem:[%s2906_s19 + $0x28] sm:$0x3] }
 0x260   :  { %1885 = vmatprep.subr.mxu1 %v583_v36 }
 0x261   :  { %1886 = vmatpush3.msra.mxu1 %v583_v36 }
 0x262   :  { %1914 = vmatprep.subr.msk.mxu1 %vm144_vm0, %v2363_v39 }
 0x318   :  { %v1876_v16 = vpop.f32.mrf.mxu1 }
 0x319   :  { %v462_v17 = vadd.f32 %v1876_v16, %v1754_v15 }
 0x31a   :  { %v456_v18 = vpop.f32.mrf.mxu1 }
 0x31b   :  { %v466_v19 = vmul.f32 0.1, %v462_v17  ;;  %v457_v20 = vadd.f32 %v1754_v15, %v456_v18 }
 0x31d   :  { %v468_v21 = vmax.f32 %v462_v17, %v466_v19  ;;  %v465_v22 = vmul.f32 0.1, %v457_v20  ;;  %v869_v19 = vld [vmem:[%s2906_s19 + $0x8] sm:$0xff] }
 0x31f   :  { %470 = vst.msk [vmem:[%s2903_s10 + $0x8] sm:$0xff] %vm2879_vm15, %v468_v21  ;;  %v467_v23 = vmax.f32 %v457_v20, %v465_v22 }
 0x320   :  { %479 = vst.msk [vmem:[#allocation3 + $0x10] sm:$0x7] %vm475_vm5, %v468_v21 }
 0x321   :  { %480 = vst.msk [vmem:[#allocation3 + $0x13] sm:$0x70] %vm477_vm13, %v468_v21  ;;  %478 = vst.msk [vmem:[#allocation3 + $0x5] sm:$0x70] %vm477_vm13, %v467_v23  ;;  %vm2881_vm13 = vcmask 261120  }
 0x322   :  { %469 = vst.msk [vmem:[%s2903_s10] sm:$0xff] %vm2879_vm15, %v467_v23 }
 0x323   :  { %476 = vst.msk [vmem:[#allocation3 + $0x2] sm:$0x7] %vm475_vm5, %v467_v23  ;;  %vm2878_vm5 = vcmask 195584  }
 0x327   :  { %v498_v24 = vld [vmem:[#allocation3 + $0xc] sm:$0xff] }
 0x328   :  { %v487_v25 = vld [vmem:[#allocation3 + $0x11] sm:$0xff]  ;;  %555 = vrot.lane.b32.xlu1 %v498_v24, %s2003_s6  ;;  %v488_v27 = vld [vmem:[#allocation3 + $0x19] sm:$0xf]  ;;  %v486_v31 = vld [vmem:[#allocation3 + $0x9] sm:$0xff] }
 0x329   :  { %509 = vrot.lane.b32.xlu0 %v487_v25, %s1999_s2  ;;  %v491_v26 = vld [vmem:[#allocation3 + $0x12] sm:$0xff]  ;;  %v490_v33 = vld [vmem:[#allocation3 + $0xa] sm:$0xff] }
 0x32a   :  { %v495_v30 = vld [vmem:[#allocation3 + $0x13] sm:$0xff]  ;;  %v485_v34 = vld [vmem:[#allocation3 + $0x1] sm:$0xff]  ;;  %v494_v37 = vld [vmem:[#allocation3 + $0xb] sm:$0xff] }
 0x32b   :  { %v489_v38 = vld [vmem:[#allocation3 + $0x2] sm:$0xff]  ;;  %v499_v45 = vld [vmem:[#allocation3 + $0x14] sm:$0xff] }
 0x32c   :  { %525 = vrot.lane.b32.xlu1 %v491_v26, %s2001_s1  ;;  %v493_v41 = vld [vmem:[#allocation3 + $0x3] sm:$0xff]  ;;  %v484_v4 = vld [vmem:[#allocation3 + $0x18] sm:$0xf]  ;;  %v483_v12 = vld [vmem:[#allocation3 + $0x10] sm:$0xff] }
 0x32d   :  { %511 = vrot.lane.b32.xlu0 %v488_v27, %s1999_s2  ;;  %v497_v43 = vld [vmem:[#allocation3 + $0x4] sm:$0xff] }
 0x32e   :  { %v482_v62 = vld [vmem:[#allocation3 + $0x8] sm:$0xff]  ;;  %v481_v1 = vld [vmem:[#allocation3] sm:$0xff] }
 0x32f   :  { %v868_v26 = vld [vmem:[%s2906_s19] sm:$0xff]  ;;  %v871_v27 = vld [vmem:[%s2906_s19 + $0x18] sm:$0xff] }
 0x330   :  { %541 = vrot.lane.b32.xlu1 %v495_v30, %s2875_s3 }
 0x331   :  { %507 = vrot.lane.b32.xlu0 %v486_v31, %s1999_s2 }
 0x334   :  { %505 = vrot.lane.b32.xlu1 %v485_v34, %s1999_s2  ;;  %v870_v34 = vld [vmem:[%s2906_s19 + $0x10] sm:$0xff] }
 0x335   :  { %523 = vrot.lane.b32.xlu0 %v490_v33, %s2001_s1 }
 0x338   :  { %521 = vrot.lane.b32.xlu1 %v489_v38, %s2001_s1 }
 0x339   :  { %539 = vrot.lane.b32.xlu0 %v494_v37, %s2875_s3 }
 0x33c   :  { %537 = vrot.lane.b32.xlu1 %v493_v41, %s2875_s3  ;;  %v872_v41 = vld [vmem:[%s2906_s19 + $0x20] sm:$0xff] }
 0x33d   :  { %559 = vrot.lane.b32.xlu0 %v500_v40, %s2003_s6 }
 0x340   :  { %553 = vrot.lane.b32.xlu1 %v497_v43, %s2003_s6 }
 0x341   :  { %888 = vrot.lane.b32.xlu0 %v875_v42, %s1996_s18 }
 0x344   :  { %557 = vrot.lane.b32.xlu1 %v499_v45, %s2003_s6 }
 0x345   :  { %892 = vrot.lane.b32.xlu0 %v877_v44, %s1996_s18 }
 0x348   :  { %886 = vrot.lane.b32.xlu1 %v874_v46, %s1996_s18 }
 0x349   :  { %896 = vrot.lane.b32.xlu0 %v879_v47, %s1996_s18  ;;  %v1758_v47 = vld [vmem:[%s2833_s12] ss:$0 sm:$0xff] }
 0x34c   :  { %890 = vrot.lane.b32.xlu1 %v876_v48, %s1996_s18 }
 0x350   :  { %894 = vrot.lane.b32.xlu1 %v878_v49, %s1996_s18 }
 0x39a   :  { %v556_v52 = vpop.permute.xlu1 %555 }
 0x39b   :  { %v510_v53 = vpop.permute.xlu0 %509 }
 0x39c   :  { %v567_v15 = vsel %vm2879_vm15, %v483_v12, %v510_v53 }
 0x39e   :  { %v526_v54 = vpop.permute.xlu1 %525 }
 0x39f   :  { %v512_v55 = vpop.permute.xlu0 %511  ;;  %v571_v18 = vsel %vm366_vm11, %v567_v15, %v526_v54 }
 0x3a0   :  { %v568_v7 = vsel %vm2879_vm15, %v484_v4, %v512_v55 }
 0x3a1   :  { %v572_v16 = vsel %vm366_vm11, %v568_v7, %v528_v50 }
 0x3a2   :  { %v542_v56 = vpop.permute.xlu1 %541  ;;  %v577_v22 = vsel %vm2878_vm5, %v572_v16, %v544_v51 }
 0x3a3   :  { %v508_v57 = vpop.permute.xlu0 %507  ;;  %v576_v20 = vsel %vm2878_vm5, %v571_v18, %v542_v56 }
 0x3a4   :  { %v566_v0 = vsel %vm2879_vm15, %v482_v62, %v508_v57 }
 0x3a6   :  { %v506_v59 = vpop.permute.xlu1 %505 }
 0x3a7   :  { %v524_v58 = vpop.permute.xlu0 %523  ;;  %v565_v6 = vsel %vm2879_vm15, %v481_v1, %v506_v59  ;;  %vm2909_vm15 = vcmask 39936  }
 0x3a8   :  { %v570_v5 = vsel %vm366_vm11, %v566_v0, %v524_v58 }
 0x3aa   :  { %v522_v61 = vpop.permute.xlu1 %521 }
 0x3ab   :  { %v540_v60 = vpop.permute.xlu0 %539  ;;  %v569_v9 = vsel %vm366_vm11, %v565_v6, %v522_v61  ;;  %v1767_v61 = vld [vmem:[%s2835_s14] ss:$0 sm:$0xff] }
 0x3ac   :  { %v575_v8 = vsel %vm2878_vm5, %v570_v5, %v540_v60 }
 0x3ad   :  { %v580_v17 = vsel %vm2881_vm13, %v575_v8, %v556_v52 }
 0x3ae   :  { %v538_v63 = vpop.permute.xlu1 %537 }
 0x3af   :  { %v560_v3 = vpop.permute.xlu0 %559  ;;  %v574_v10 = vsel %vm2878_vm5, %v569_v9, %v538_v63 }
 0x3b0   :  { %v582_v24 = vsel %vm2881_vm13, %v577_v22, %v560_v3 }
 0x3b2   :  { %v554_v11 = vpop.permute.xlu1 %553 }
 0x3b3   :  { %v579_v13 = vsel %vm2881_vm13, %v574_v10, %v554_v11  ;;  %v889_v14 = vpop.permute.xlu0 %888 }
 0x3b4   :  { %1887 = vmatprep.mubr.msk.f32.mxu1 %vm2880_vm6, %v579_v13  ;;  %v911_v25 = vsel %vm108_vm2, %v869_v19, %v889_v14 }
 0x3b5   :  { %1888 = vmatmul.mubr.msk.f32.vlgmr.msra.gmra.mxu1 %vm2880_vm6, %v580_v17 }
 0x3b6   :  { %v558_v21 = vpop.permute.xlu1 %557  ;;  %1915 = vmatpush3.msk.msra.mxu1 %vm144_vm0, %v2363_v39  ;;  %vm2907_vm0 = vcmask 31744  }
 0x3b7   :  { %v581_v23 = vsel %vm2881_vm13, %v576_v20, %v558_v21  ;;  %1940 = vmatprep.subr.mxu1 %v1995_v2  ;;  %v893_v28 = vpop.permute.xlu0 %892  ;;  %v917_v30 = vsel %vm2907_vm0, %v911_v25, %v889_v14  ;;  %vm2908_vm5 = vmmov %vm2907_vm0 }
 0x3b8   :  { %1890 = vmatprep.mubr.msk.f32.mxu1 %vm2880_vm6, %v581_v23  ;;  %v913_v33 = vsel %vm108_vm2, %v871_v27, %v893_v28  ;;  %v766_v23 = vld [vmem:[%s2837_s5 + $0x28] sm:$0xff]  ;;  %v764_v27 = vld [vmem:[%s2837_s5 + $0x18] sm:$0xff] }
 0x3b9   :  { %1891 = vmatmul.mubr.msk.f32.gmra.mxu1 %vm2880_vm6, %v582_v24  ;;  %vm2910_vm6 = vmmov %vm2909_vm15  ;;  %v919_v38 = vsel %vm2907_vm0, %v913_v33, %v893_v28  ;;  %v765_v24 = vld [vmem:[%s2837_s5 + $0x20] sm:$0xff]  ;;  %1894 = vmatpush3.msra.mxu0 %v766_v23 }
 0x3ba   :  { %v887_v29 = vpop.permute.xlu1 %886  ;;  %vm2913_vm13 = vmmov %vm2910_vm6  ;;  %1895 = vmatprep.subr.mxu0 %v1995_v2 }
 0x3bb   :  { %v910_v31 = vsel %vm108_vm2, %v868_v26, %v887_v29  ;;  %v897_v36 = vpop.permute.xlu0 %896  ;;  %vm2915_vm3 = vmmov %vm2913_vm13  ;;  %1896 = vmatpush3.msra.mxu0 %v765_v24 }
 0x3bc   :  { %v916_v32 = vsel %vm2908_vm5, %v910_v31, %v887_v29  ;;  %vm2911_vm5 = vmmov %vm2907_vm0  ;;  %v915_v42 = vsel %vm108_vm2, %v873_v35, %v897_v36  ;;  %1897 = vmatprep.subr.mxu0 %v1995_v2  ;;  %v763_v29 = vld [vmem:[%s2837_s5 + $0x10] sm:$0xff]  ;;  %v761_v31 = vld [vmem:[%s2837_s5] sm:$0xff] }
 0x3bd   :  { %1916 = vmatprep.mubr.msk.f32.mxu1 %vm2909_vm15, %v916_v32  ;;  %vm2912_vm15 = vmmov %vm2910_vm6  ;;  %1898 = vmatpush3.msra.mxu0 %v764_v27 }
 0x3be   :  { %v891_v37 = vpop.permute.xlu1 %890  ;;  %1917 = vmatmul.mubr.msk.f32.vlgmr.msra.gmra.mxu1 %vm2910_vm6, %v917_v30  ;;  %vm2914_vm6 = vmmov %vm2907_vm0  ;;  %1899 = vmatprep.subr.mxu0 %v1995_v2  ;;  %v762_v30 = vld [vmem:[%s2837_s5 + $0x8] sm:$0xff] }
 0x3bf   :  { %v912_v39 = vsel %vm108_vm2, %v870_v34, %v891_v37  ;;  %v921_v45 = vsel %vm2914_vm6, %v915_v42, %v897_v36  ;;  %vm712_vm6 = vcmask 130055   ;;  %1900 = vmatpush3.msra.mxu0 %v763_v29 }
 0x3c0   :  { %v918_v40 = vsel %vm2911_vm5, %v912_v39, %v891_v37  ;;  %vm2916_vm5 = vmmov %vm2915_vm3  ;;  %1901 = vmatprep.subr.mxu0 %v1995_v2 }
 0x3c1   :  { %1919 = vmatprep.mubr.msk.f32.mxu1 %vm2912_vm15, %v918_v40  ;;  %vm708_vm15 = vcmask 128000   ;;  %1902 = vmatpush3.msra.mxu0 %v762_v30  ;;  %v1431_v30 = vld [vmem:[%s2841_s8 + $0x20] sm:$0xff] }
 0x3c2   :  { %1920 = vmatmul.mubr.msk.f32.gmra.mxu1 %vm2913_vm13, %v919_v38  ;;  %v895_v43 = vpop.permute.xlu1 %894  ;;  %709 = vst.msk [vmem:[#allocation4 + $0x10] sm:$0x3f] %vm708_vm15, %v1995_v2  ;;  %vm1067_vm13 = vcmask 92160   ;;  %vm720_vm15 = vcmask 130053   ;;  %1903 = vmatprep.subr.mxu0 %v1995_v2 }
 0x3c3   :  { %v914_v44 = vsel %vm108_vm2, %v872_v41, %v895_v43  ;;  %1068 = vst.msk [vmem:[#allocation5 + $0x10] sm:$0x7] %vm1067_vm13, %v1995_v2  ;;  %vm2886_vm2 = vcmask 130054   ;;  %vm2918_vm13 = vcmask 24576   ;;  %1904 = vmatpush3.msra.mxu0 %v761_v31  ;;  %v1430_v31 = vld [vmem:[%s2841_s8 + $0x18] sm:$0xff]  ;;  %1941 = vmatpush3.msra.mxu1 %v1431_v30 }
 0x3c4   :  { %v920_v46 = vsel %vm2907_vm0, %v914_v44, %v895_v43  ;;  %vm2885_vm0 = vcmask 125952   ;;  %1925 = vmatprep.subr.mxu0 %v1995_v2  ;;  %1942 = vmatprep.subr.mxu1 %v1995_v2 }
 0x3c5   :  { %1922 = vmatprep.mubr.msk.f32.mxu1 %vm2915_vm3, %v920_v46  ;;  %vm710_vm3 = vcmask 124928   ;;  %1943 = vmatpush3.msra.mxu1 %v1430_v31 }
 0x3c6   :  { %1923 = vmatmul.mubr.msk.f32.gmra.mxu1 %vm2916_vm5, %v921_v45  ;;  %vm718_vm5 = vcmask 122880   ;;  %1944 = vmatprep.subr.mxu1 %v1995_v2 }
 0x3c7   :  { %1950 = vmatprep.mubr.msk.f32.mxu1 %vm2917_vm14, %v1995_v2 }
 0x475   :  { %v1889_v48 = vpop.f32.mrf.mxu1 }
 0x476   :  { %v680_v49 = vadd.f32 %v1889_v48, %v1758_v47 }
 0x477   :  { %v674_v50 = vpop.f32.mrf.mxu1 }
 0x478   :  { %v694_v51 = vmul.f32 0.1, %v680_v49  ;;  %v675_v52 = vadd.f32 %v1758_v47, %v674_v50  ;;  %v31_v50 = vstv %s2838_s13 }
 0x479   :  { %v1892_v53 = vpop.f32.mrf.mxu1  ;;  %32 = vst [vmem:[#allocation8] sm:$0x1] %v31_v50 }
 0x47a   :  { %v698_v54 = vmax.f32 %v680_v49, %v694_v51  ;;  %v693_v55 = vmul.f32 0.1, %v675_v52  ;;  %v690_v56 = vadd.f32 %v1892_v53, %v1758_v47 }
 0x47b   :  { %v684_v57 = vpop.f32.mrf.mxu1 }
 0x47c   :  { %702 = vst.msk [vmem:[%s2834_s20 + $0x8] sm:$0xff] %vm366_vm11, %v698_v54  ;;  %v697_v58 = vmax.f32 %v675_v52, %v693_v55  ;;  %v696_v59 = vmul.f32 0.1, %v690_v56  ;;  %v685_v60 = vadd.f32 %v1758_v47, %v684_v57  ;;  %v1174_v57 = vld [vmem:[%s2839_s7 + $0x10] sm:$0xf] }
 0x47d   :  { %715 = vst.msk [vmem:[#allocation4 + $0x7] sm:$0x3] %vm714_vm4, %v698_v54 }
 0x47e   :  { %717 = vst.msk [vmem:[#allocation4 + $0x5] sm:$0xc0] %vm2886_vm2, %v698_v54  ;;  %v700_v62 = vmax.f32 %v690_v56, %v696_v59  ;;  %v695_v63 = vmul.f32 0.1, %v685_v60  ;;  %v1918_v0 = vpop.f32.mrf.mxu1  ;;  %vm2941_vm2 = vcmask 59426   ;;  %v1173_v59 = vld [vmem:[%s2839_s7 + $0x8] sm:$0xff] }
 0x47f   :  { %701 = vst.msk [vmem:[%s2834_s20] sm:$0xff] %vm366_vm11, %v697_v58  ;;  %v1023_v1 = vadd.f32 %v1918_v0, %v1767_v61  ;;  %v1172_v0 = vld [vmem:[%s2839_s7] sm:$0xff] }
 0x480   :  { %711 = vst.msk [vmem:[#allocation4 + $0x1] sm:$0x7] %vm710_vm3, %v697_v58  ;;  %v699_v3 = vmax.f32 %v685_v60, %v695_v63  ;;  %v1017_v4 = vpop.f32.mrf.mxu1  ;;  %vm2919_vm3 = vcmask 27651  }
 0x481   :  { %713 = vst.msk [vmem:[#allocation4 - $0x1] sm:$0x80] %vm712_vm6, %v697_v58  ;;  %v1047_v5 = vmul.f32 0.1, %v1023_v1  ;;  %v1018_v6 = vadd.f32 %v1767_v61, %v1017_v4  ;;  %vm2920_vm6 = vcmask 31751  }
 0x482   :  { %705 = vst.msk [vmem:[%s2834_s20 + $0x18] sm:$0xf] %vm2885_vm0, %v700_v62  ;;  %v1921_v7 = vpop.f32.mrf.mxu1  ;;  %vm2921_vm0 = vcmask 31744  }
 0x483   :  { %703 = vst.msk [vmem:[%s2834_s20 + $0x10] sm:$0xff] %vm366_vm11, %v699_v3  ;;  %v1053_v8 = vmax.f32 %v1023_v1, %v1047_v5  ;;  %v1046_v9 = vmul.f32 0.1, %v1018_v6  ;;  %v1033_v10 = vadd.f32 %v1921_v7, %v1767_v61  ;;  %s2957_s20 = smov 24  }
 0x484   :  { %719 = vst.msk [vmem:[#allocation4 + $0xd] sm:$0x1] %vm718_vm5, %v699_v3  ;;  %v1027_v11 = vpop.f32.mrf.mxu1  ;;  %vm2922_vm5 = vmmov %vm2921_vm0 }
 0x485   :  { %721 = vst.msk [vmem:[#allocation4 + $0xb] sm:$0xe0] %vm720_vm15, %v699_v3  ;;  %v1052_v12 = vmax.f32 %v1018_v6, %v1046_v9  ;;  %v1049_v13 = vmul.f32 0.1, %v1033_v10  ;;  %v1028_v14 = vadd.f32 %v1767_v61, %v1027_v11  ;;  %1085 = vrot.lane.b32.xlu0 %v1053_v8, %s1998_s30  ;;  %vm2923_vm15 = vcmask 25601  }
 0x486   :  { %1083 = vst.msk [vmem:[#allocation5 + $0x4] sm:$0x1] %vm2918_vm13, %v1053_v8  ;;  %v1924_v15 = vpop.f32.mrf.mxu1  ;;  %vm2924_vm13 = vcmask 28676  }
 0x487   :  { %1094 = vst.msk [vmem:[#allocation5 + $0x2] sm:$0x8] %vm2919_vm3, %v1053_v8  ;;  %v1055_v16 = vmax.f32 %v1033_v10, %v1049_v13  ;;  %v1048_v17 = vmul.f32 0.1, %v1028_v14  ;;  %1075 = vrot.lane.b32.xlu1 %v1052_v12, %s1998_s30  ;;  %v1043_v18 = vadd.f32 %v1924_v15, %v1767_v61  ;;  %vm2925_vm3 = vmmov %vm2923_vm15 }
 0x488   :  { %1097 = vst.msk [vmem:[#allocation5] sm:$0x80] %vm2920_vm6, %v1053_v8  ;;  %v1037_v19 = vpop.f32.mrf.mxu1  ;;  %vm2926_vm6 = vcmask 29701   ;;  %v725_v32 = vld [vmem:[#allocation4 + $0x1] sm:$0xff] }
 0x489   :  { %1059 = vst.msk [vmem:[%s2836_s22 + $0x8] sm:$0xff] %vm2921_vm0, %v1053_v8  ;;  %1061 = vst.msk [vmem:[%s2836_s22 + $0x18] sm:$0xff] %vm2921_vm0, %v1055_v16  ;;  %v1054_v20 = vmax.f32 %v1028_v14, %v1048_v17  ;;  %v1051_v21 = vmul.f32 0.1, %v1043_v18  ;;  %1070 = vrot.lane.b32.xlu0 %v1052_v12, %s1999_s2  ;;  %v1038_v22 = vadd.f32 %v1767_v61, %v1037_v19  ;;  %v728_v34 = vld [vmem:[#allocation4 + $0x2] sm:$0xff] }
 0x48a   :  { %1058 = vst.msk [vmem:[%s2836_s22] sm:$0xff] %vm2922_vm5, %v1052_v12  ;;  %vm1063_vm5 = vcmask 25600   ;;  %v722_v52 = vld [vmem:[#allocation4] sm:$0xff] }
 0x48b   :  { %1074 = vst.msk [vmem:[#allocation5] sm:$0x2] %vm2923_vm15, %v1052_v12  ;;  %vm2927_vm15 = vmmov %vm2921_vm0  ;;  %vm2929_vm0 = vcmask 30726   ;;  %v1057_v25 = vmax.f32 %v1043_v18, %v1051_v21  ;;  %v1050_v26 = vmul.f32 0.1, %v1038_v22  ;;  %1099 = vrot.lane.b32.xlu1 %v1054_v20, %s1998_s30  ;;  %v723_v60 = vld [vmem:[#allocation4 + $0x8] sm:$0xff] }
 0x48c   :  { %1080 = vst.msk [vmem:[#allocation5 - $0x2] sm:$0x10] %vm2924_vm13, %v1052_v12  ;;  %vm2928_vm13 = vcmask 26626   ;;  %v726_v33 = vld [vmem:[#allocation4 + $0x9] sm:$0xff]  ;;  %v727_v35 = vld [vmem:[#allocation4 + $0x11] sm:$0xf] }
 0x48d   :  { %1117 = vst.msk [vmem:[#allocation5 + $0xa] sm:$0x2] %vm2925_vm3, %v1055_v16  ;;  %v1056_v28 = vmax.f32 %v1038_v22, %v1050_v26  ;;  %1103 = vrot.lane.b32.xlu0 %v1054_v20, %s1999_s2  ;;  %vm2930_vm3 = vmmov %vm2927_vm15  ;;  %v729_v36 = vld [vmem:[#allocation4 + $0xa] sm:$0xff]  ;;  %v730_v37 = vld [vmem:[#allocation4 + $0x12] sm:$0xf] }
 0x48e   :  { %1123 = vst.msk [vmem:[#allocation5 + $0x8] sm:$0x20] %vm2926_vm6, %v1055_v16  ;;  %vm2931_vm6 = vcmask 24576   ;;  %v724_v4 = vld [vmem:[#allocation4 + $0x10] sm:$0xf] }
 0x48f   :  { %1060 = vst.msk [vmem:[%s2836_s22 + $0x10] sm:$0xff] %vm2927_vm15, %v1054_v20  ;;  %1090 = vrot.lane.b32.xlu1 %v1053_v8, %s1999_s2  ;;  %vm2933_vm15 = vcmask 31751  }
 0x490   :  { %1107 = vst.msk [vmem:[#allocation5 + $0x6] sm:$0x4] %vm2928_vm13, %v1054_v20  ;;  %vm1088_vm13 = vcmask 58401  }
 0x491   :  { %1110 = vst.msk [vmem:[#allocation5 + $0x4] sm:$0x40] %vm2929_vm0, %v1054_v20  ;;  %1128 = vrot.lane.b32.xlu0 %v1056_v28, %s1998_s30  ;;  %vm2934_vm0 = vcmask 59426   ;;  %v1763_v20 = vld [vmem:[#allocation8] ss:$0 sm:$0xff] }
 0x492   :  { %1064 = vst.msk [vmem:[%s2836_s22 + $0x28] sm:$0x3] %vm1063_vm5, %v1057_v25  ;;  %vm2932_vm5 = vcmask 28676  }
 0x493   :  { %1062 = vst.msk [vmem:[%s2836_s22 + $0x20] sm:$0xff] %vm2930_vm3, %v1056_v28  ;;  %1118 = vrot.lane.b32.xlu1 %v1055_v16, %s1998_s30  ;;  %vm2935_vm3 = vcmask 60451  }
 0x494   :  { %1126 = vst.msk [vmem:[#allocation5 + $0xe] sm:$0x1] %vm2931_vm6, %v1056_v28  ;;  %vm2936_vm6 = vcmask 64551  }
 0x495   :  { %1136 = vst.msk [vmem:[#allocation5 + $0xc] sm:$0x10] %vm2932_vm5, %v1056_v28  ;;  %1132 = vrot.lane.b32.xlu0 %v1056_v28, %s1999_s2  ;;  %vm2938_vm5 = vcmask 95301  }
 0x496   :  { %1139 = vst.msk [vmem:[#allocation5 + $0xa] sm:$0x80] %vm2933_vm15, %v1056_v28  ;;  %vm2939_vm15 = vcmask 92226  }
 0x497   :  { %1113 = vrot.lane.b32.xlu1 %v1055_v16, %s1999_s2 }
 0x499   :  { %734 = vrot.lane.b32.xlu0 %v725_v32, %s2001_s1  ;;  %v1775_v32 = vld [vmem:[%s2842_s15] ss:$0 sm:$0xff] }
 0x49b   :  { %1141 = vrot.lane.b32.xlu1 %v1057_v25, %s1998_s30 }
 0x49d   :  { %736 = vrot.lane.b32.xlu0 %v726_v33, %s2001_s1 }
 0x49f   :  { %746 = vrot.lane.b32.xlu1 %v728_v34, %s2003_s6 }
 0x4a1   :  { %738 = vrot.lane.b32.xlu0 %v727_v35, %s2001_s1 }
 0x4a3   :  { %748 = vrot.lane.b32.xlu1 %v729_v36, %s2003_s6  ;;  %v1429_v36 = vld [vmem:[%s2841_s8 + $0x10] sm:$0xff] }
 0x4a4   :  { %1945 = vmatpush3.msra.mxu1 %v1429_v36 }
 0x4a5   :  { %1946 = vmatprep.subr.mxu1 %v1995_v2 }
 0x4a7   :  { %750 = vrot.lane.b32.xlu1 %v730_v37, %s2003_s6  ;;  %v1428_v37 = vld [vmem:[%s2841_s8 + $0x8] sm:$0xff] }
 0x4a8   :  { %1947 = vmatpush3.msra.mxu1 %v1428_v37 }
 0x4a9   :  { %1948 = vmatprep.subr.mxu1 %v1995_v2 }
 0x4f7   :  { %v1086_v38 = vpop.permute.xlu0 %1085 }
 0x4f8   :  { %1089 = vst.msk [vmem:[#allocation5 + $0x3] sm:$0x2] %vm1088_vm13, %v1086_v38 }
 0x4f9   :  { %1095 = vst.msk [vmem:[#allocation5 + $0x1] sm:$0x10] %vm316_vm1, %v1086_v38  ;;  %v1076_v39 = vpop.permute.xlu1 %1075  ;;  %vm2937_vm1 = vcmask 91201  }
 0x4fa   :  { %1078 = vst.msk [vmem:[#allocation5 - $0x1] sm:$0x4] %vm2934_vm0, %v1076_v39  ;;  %vm2940_vm0 = vcmask 96326  }
 0x4fb   :  { %1081 = vst.msk [vmem:[#allocation5 - $0x3] sm:$0x20] %vm276_vm12, %v1076_v39  ;;  %v1071_v40 = vpop.permute.xlu0 %1070 }
 0x4fc   :  { %1073 = vst.msk [vmem:[#allocation5] sm:$0x1] %vm263_vm10, %v1071_v40 }
 0x4fd   :  { %1079 = vst.msk [vmem:[#allocation5 - $0x2] sm:$0x8] %vm272_vm7, %v1071_v40  ;;  %v1100_v41 = vpop.permute.xlu1 %1099 }
 0x4fe   :  { %1082 = vst.msk [vmem:[#allocation5 - $0x4] sm:$0x80] %vm301_vm8, %v1071_v40  ;;  %v1427_v40 = vld [vmem:[%s2841_s8] sm:$0xff] }
 0x4ff   :  { %1102 = vst.msk [vmem:[#allocation5 + $0x7] sm:$0x1] %vm342_vm9, %v1100_v41  ;;  %v1104_v42 = vpop.permute.xlu0 %1103  ;;  %1949 = vmatpush3.msra.mxu1 %v1427_v40 }
 0x500   :  { %1108 = vst.msk [vmem:[#allocation5 + $0x5] sm:$0x8] %vm2935_vm3, %v1100_v41  ;;  %vm2942_vm3 = vcmask 63526  }
 0x501   :  { %1111 = vst.msk [vmem:[#allocation5 + $0x3] sm:$0x80] %vm2936_vm6, %v1100_v41  ;;  %v1091_v43 = vpop.permute.xlu1 %1090  ;;  %vm2943_vm6 = vmmov %vm2940_vm0 }
 0x502   :  { %1106 = vst.msk [vmem:[#allocation5 + $0x6] sm:$0x2] %vm2937_vm1, %v1104_v42  ;;  %vm2944_vm1 = vcmask 94276  }
 0x503   :  { %1109 = vst.msk [vmem:[#allocation5 + $0x4] sm:$0x20] %vm2938_vm5, %v1104_v42  ;;  %v1129_v44 = vpop.permute.xlu0 %1128 }
 0x504   :  { %1093 = vst.msk [vmem:[#allocation5 + $0x2] sm:$0x4] %vm2939_vm15, %v1091_v43 }
 0x505   :  { %1096 = vst.msk [vmem:[#allocation5] sm:$0x40] %vm2940_vm0, %v1091_v43  ;;  %v1119_v45 = vpop.permute.xlu1 %1118 }
 0x506   :  { %1131 = vst.msk [vmem:[#allocation5 + $0xd] sm:$0x2] %vm1088_vm13, %v1129_v44  ;;  %vm2950_vm13 = vcmask 162816  }
 0x507   :  { %1137 = vst.msk [vmem:[#allocation5 + $0xb] sm:$0x20] %vm276_vm12, %v1129_v44  ;;  %v1133_v46 = vpop.permute.xlu0 %1132  ;;  %vm2952_vm15 = vmmov %vm2950_vm13 }
 0x508   :  { %1121 = vst.msk [vmem:[#allocation5 + $0x9] sm:$0x4] %vm2941_vm2, %v1119_v45  ;;  %vm2949_vm2 = vcmask 97280  }
 0x509   :  { %1124 = vst.msk [vmem:[#allocation5 + $0x7] sm:$0x40] %vm2942_vm3, %v1119_v45  ;;  %v1114_v47 = vpop.permute.xlu1 %1113  ;;  %vm2951_vm5 = vmmov %vm2949_vm2 }
 0x50a   :  { %1135 = vst.msk [vmem:[#allocation5 + $0xc] sm:$0x8] %vm272_vm7, %v1133_v46  ;;  %vm774_vm7 = vcmask 392192   ;;  %vm2953_vm0 = vmmov %vm2949_vm2 }
 0x50b   :  { %1138 = vst.msk [vmem:[#allocation5 + $0xa] sm:$0x40] %vm2943_vm6, %v1133_v46  ;;  %v735_v49 = vpop.permute.xlu0 %734  ;;  %vm2954_vm3 = vmmov %vm2950_vm13  ;;  %vm101_vm6 = vcmask 7168  }
 0x50c   :  { %v1148_v48 = vld [vmem:[#allocation5 + $0x1] sm:$0xff]  ;;  %1116 = vst.msk [vmem:[#allocation5 + $0xa] sm:$0x1] %vm263_vm10, %v1114_v47  ;;  %v755_v54 = vsel %vm366_vm11, %v722_v52, %v735_v49 }
 0x50d   :  { %1122 = vst.msk [vmem:[#allocation5 + $0x8] sm:$0x10] %vm2944_vm1, %v1114_v47  ;;  %1154 = vrot.lane.b32.xlu0 %v1148_v48, %s2000_s27  ;;  %v1142_v51 = vpop.permute.xlu1 %1141  ;;  %v1145_v8 = vld [vmem:[#allocation5] sm:$0xff]  ;;  %vm866_vm1 = vcmask 3072  }
 0x50e   :  { %1125 = vst.msk [vmem:[#allocation5 + $0x6] sm:$0x80] %vm301_vm8, %v1114_v47  ;;  %vm2945_vm8 = vcmask 261120  }
 0x50f   :  { %1144 = vst.msk [vmem:[#allocation5 + $0x11] sm:$0x1] %vm342_vm9, %v1142_v51  ;;  %v737_v53 = vpop.permute.xlu0 %736  ;;  %vm2946_vm9 = vcmask 1043456   ;;  %vm2947_vm10 = vmmov %vm2945_vm8 }
 0x510   :  { %v756_v61 = vsel %vm366_vm11, %v723_v60, %v737_v53  ;;  %vm2948_vm12 = vmmov %vm2945_vm8 }
 0x511   :  { %v747_v55 = vpop.permute.xlu1 %746 }
 0x512   :  { %v758_v58 = vsel %vm2945_vm8, %v755_v54, %v747_v55  ;;  %vm1290_vm8 = vcmask 61443  }
 0x513   :  { %1906 = vmatmul.mubr.msk.f32.vlgmr.msra.gmra.mxu0 %vm774_vm7, %v758_v58  ;;  %v739_v1 = vpop.permute.xlu0 %738 }
 0x514   :  { %1908 = vmatprep.mubr.msk.f32.mxu0 %vm2917_vm14, %v1995_v2  ;;  %1926 = vmatpush3.msk.msra.mxu0 %vm2946_vm9, %v1174_v57  ;;  %v757_v5 = vsel %vm366_vm11, %v724_v4, %v739_v1  ;;  %vm1292_vm9 = vcmask 64518   ;;  %v1321_v4 = vld [vmem:[#allocation6 + $0x23] sm:$0xf] }
 0x515   :  { %v1149_v56 = vld [vmem:[#allocation5 + $0x9] sm:$0xff]  ;;  %v749_v62 = vpop.permute.xlu1 %748  ;;  %1927 = vmatprep.subr.mxu0 %v1995_v2 }
 0x516   :  { %1156 = vrot.lane.b32.xlu1 %v1149_v56, %s2000_s27  ;;  %v1150_v63 = vld [vmem:[#allocation5 + $0x11] sm:$0x3]  ;;  %v759_v3 = vsel %vm2947_vm10, %v756_v61, %v749_v62  ;;  %1928 = vmatpush3.msra.mxu0 %v1173_v59  ;;  %v1146_v12 = vld [vmem:[#allocation5 + $0x8] sm:$0xff]  ;;  %vm1282_vm10 = vcmask 58368  }
 0x517   :  { %1158 = vrot.lane.b32.xlu0 %v1150_v63, %s2000_s27  ;;  %1909 = vmatmul.mubr.msk.f32.gmra.mxu0 %vm774_vm7, %v759_v3  ;;  %v1147_v16 = vld [vmem:[#allocation5 + $0x10] sm:$0x3] }
 0x518   :  { %1929 = vmatprep.subr.mxu0 %v1995_v2  ;;  %1911 = vmatprep.mubr.msk.f32.mxu0 %vm2917_vm14, %v1995_v2 }
 0x519   :  { %1930 = vmatpush3.msra.mxu0 %v1172_v0  ;;  %v751_v6 = vpop.permute.xlu1 %750 }
 0x51a   :  { %1965 = vmatprep.subr.mxu0 %v1995_v2  ;;  %v760_v7 = vsel %vm2948_vm12, %v757_v5, %v751_v6  ;;  %vm2955_vm12 = vcmask 64512   ;;  %v1316_v5 = vld [vmem:[#allocation6 + $0x22] sm:$0xf] }
 0x51b   :  { %1912 = vmatmul.mubr.msk.f32.gmra.mxu0 %vm774_vm7, %v760_v7 }
 0x51c   :  { %1931 = vmatprep.mubr.msk.f32.mxu0 %vm2917_vm14, %v1995_v2 }
 0x57f   :  { %v1155_v9 = vpop.permute.xlu0 %1154 }
 0x580   :  { %v1166_v10 = vsel %vm2949_vm2, %v1145_v8, %v1155_v9  ;;  %vm1294_vm2 = vcmask 59393  }
 0x581   :  { %v1169_v11 = vsel %vm366_vm11, %v1166_v10, %v1155_v9 }
 0x582   :  { %1932 = vmatmul.mubr.msk.f32.vlgmr.msra.gmra.mxu0 %vm2950_vm13, %v1169_v11  ;;  %vm1296_vm13 = vcmask 62468  }
 0x583   :  { %1934 = vmatprep.mubr.msk.f32.mxu0 %vm2917_vm14, %v1995_v2 }
 0x588   :  { %v1157_v13 = vpop.permute.xlu1 %1156 }
 0x589   :  { %v1167_v14 = vsel %vm2951_vm5, %v1146_v12, %v1157_v13  ;;  %v1159_v17 = vpop.permute.xlu0 %1158  ;;  %vm1298_vm5 = vcmask 64519  }
 0x58a   :  { %v1170_v15 = vsel %vm366_vm11, %v1167_v14, %v1157_v13  ;;  %v1168_v18 = vsel %vm2953_vm0, %v1147_v16, %v1159_v17  ;;  %vm1300_vm0 = vcmask 57344  }
 0x58b   :  { %1935 = vmatmul.mubr.msk.f32.gmra.mxu0 %vm2952_vm15, %v1170_v15  ;;  %v1171_v19 = vsel %vm366_vm11, %v1168_v18, %v1159_v17  ;;  %vm2956_vm15 = vmmov %vm2955_vm12 }
 0x58c   :  { %1937 = vmatprep.mubr.msk.f32.mxu0 %vm2917_vm14, %v1995_v2 }
 0x58f   :  { %1938 = vmatmul.mubr.msk.f32.gmra.mxu0 %vm2954_vm3, %v1171_v19  ;;  %vm2958_vm3 = vmmov %vm2955_vm12 }
 0x590   :  { %1977 = vmatprep.mubr.msk.f32.mxu0 %vm2917_vm14, %v1995_v2 }
 0x5d3   :  { %v850_v21 = vpop.f32.mrf.mxu0 }
 0x5d4   :  { %v851_v22 = vadd.f32 %v1763_v20, %v850_v21 }
 0x5d5   :  { %v1907_v23 = vpop.f32.mrf.mxu0 }
 0x5d6   :  { %864 = vst.msk [vmem:[%s2840_s21] sm:$0xff] %vm101_vm6, %v851_v22 }
 0x5d7   :  { %v855_v24 = vpop.f32.mrf.mxu0 }
 0x5d8   :  { %v856_v25 = vadd.f32 %v1763_v20, %v855_v24 }
 0x5d9   :  { %v1910_v26 = vpop.f32.mrf.mxu0 }
 0x5da   :  { %865 = vst.msk [vmem:[%s2840_s21 + $0x8] sm:$0xff] %vm101_vm6, %v856_v25 }
 0x5db   :  { %v860_v27 = vpop.f32.mrf.mxu0 }
 0x5dc   :  { %v861_v28 = vadd.f32 %v1763_v20, %v860_v27 }
 0x5dd   :  { %v1913_v29 = vpop.f32.mrf.mxu0 }
 0x5de   :  { %867 = vst.msk [vmem:[%s2840_s21 + $0x10] sm:$0xf] %vm866_vm1, %v861_v28  ;;  %vm2959_vm1 = vcmask 195584  }
 0x642   :  { %v1260_v33 = vpop.f32.mrf.mxu0 }
 0x643   :  { %v1261_v34 = vadd.f32 %v1775_v32, %v1260_v33 }
 0x644   :  { %v1933_v35 = vpop.f32.mrf.mxu0 }
 0x645   :  { %v1274_v38 = vmul.f32 0.1, %v1261_v34 }
 0x647   :  { %v1277_v39 = vmax.f32 %v1261_v34, %v1274_v38 }
 0x649   :  { %1291 = vst.msk [vmem:[#allocation6 + $0x5] sm:$0x18] %vm1290_vm8, %v1277_v39  ;;  %vm2960_vm8 = vcmask 261120  }
 0x64a   :  { %1293 = vst.msk [vmem:[#allocation6 + $0x8] sm:$0xc0] %vm1292_vm9, %v1277_v39  ;;  %vm2961_vm9 = vcmask 326656  }
 0x64b   :  { %1280 = vst.msk [vmem:[%s2843_s23] sm:$0xff] %vm2955_vm12, %v1277_v39  ;;  %v1265_v41 = vpop.f32.mrf.mxu0  ;;  %vm2963_vm12 = vmmov %vm2959_vm1 }
 0x64c   :  { %1289 = vst.msk [vmem:[#allocation6 + $0x2] sm:$0x3] %vm1282_vm10, %v1277_v39  ;;  %v1266_v42 = vadd.f32 %v1775_v32, %v1265_v41 }
 0x64d   :  { %v1936_v43 = vpop.f32.mrf.mxu0 }
 0x64e   :  { %v1275_v44 = vmul.f32 0.1, %v1266_v42  ;;  %v1615_v43 = vld [vmem:[%s2844_s9 + $0x28] sm:$0xff] }
 0x64f   :  { %v1270_v45 = vpop.f32.mrf.mxu0  ;;  %1966 = vmatpush3.msra.mxu0 %v1615_v43 }
 0x650   :  { %v1278_v46 = vmax.f32 %v1266_v42, %v1275_v44  ;;  %v1271_v47 = vadd.f32 %v1775_v32, %v1270_v45  ;;  %v1322_v53 = vld [vmem:[#allocation6 + $0x4] sm:$0xff]  ;;  %1967 = vmatprep.subr.mxu0 %v1995_v2  ;;  %v2733_v44 = vld [vmem:[%s2845_s16] ss:$0 sm:$0xff] }
 0x651   :  { %v1939_v48 = vpop.f32.mrf.mxu0  ;;  %v1313_v55 = vld [vmem:[#allocation6 + $0xa] sm:$0xff] }
 0x652   :  { %1295 = vst.msk [vmem:[#allocation6 + $0x13] sm:$0x6] %vm1294_vm2, %v1278_v46  ;;  %v1276_v51 = vmul.f32 0.1, %v1271_v47  ;;  %v1308_v56 = vld [vmem:[#allocation6 + $0x9] sm:$0xff]  ;;  %vm2964_vm2 = vmmov %vm2960_vm8  ;;  %v1614_v48 = vld [vmem:[%s2844_s9 + $0x20] sm:$0xff] }
 0x653   :  { %v1312_v49 = vld [vmem:[#allocation6 + $0x2] sm:$0xff]  ;;  %1297 = vst.msk [vmem:[#allocation6 + $0x16] sm:$0x30] %vm1296_vm13, %v1278_v46  ;;  %v1323_v57 = vld [vmem:[#allocation6 + $0xc] sm:$0xff]  ;;  %vm2965_vm13 = vmmov %vm2961_vm9  ;;  %1968 = vmatpush3.msra.mxu0 %v1614_v48 }
 0x654   :  { %v1307_v50 = vld [vmem:[#allocation6 + $0x1] sm:$0xff]  ;;  %1299 = vst.msk [vmem:[#allocation6 + $0x19] sm:$0x80] %vm1298_vm5, %v1278_v46  ;;  %1352 = vrot.lane.b32.xlu0 %v1312_v49, %s2001_s1  ;;  %v1279_v52 = vmax.f32 %v1271_v47, %v1276_v51  ;;  %v1318_v58 = vld [vmem:[#allocation6 + $0xb] sm:$0xff]  ;;  %vm2966_vm5 = vmmov %vm2958_vm3  ;;  %1969 = vmatprep.subr.mxu0 %v1995_v2 }
 0x655   :  { %1281 = vst.msk [vmem:[%s2843_s23 + $0x8] sm:$0xff] %vm2956_vm15, %v1278_v46  ;;  %1332 = vrot.lane.b32.xlu1 %v1307_v50, %s1999_s2  ;;  %v1317_v54 = vld [vmem:[#allocation6 + $0x3] sm:$0xff]  ;;  %vm2967_vm15 = vmmov %vm2959_vm1  ;;  %v1613_v49 = vld [vmem:[%s2844_s9 + $0x18] sm:$0xff] }
 0x656   :  { %1283 = vst.msk [vmem:[%s2843_s23 + $0x10] sm:$0x3] %vm1282_vm10, %v1279_v52  ;;  %v1302_v9 = vld [vmem:[#allocation6] sm:$0xff]  ;;  %v1303_v17 = vld [vmem:[#allocation6 + $0x8] sm:$0xff]  ;;  %vm2962_vm10 = vmmov %vm2958_vm3  ;;  %1970 = vmatpush3.msra.mxu0 %v1613_v49 }
 0x657   :  { %1301 = vst.msk [vmem:[#allocation6 + $0x21] sm:$0x1] %vm1300_vm0, %v1279_v52  ;;  %vm2968_vm0 = vmmov %vm2964_vm2  ;;  %1971 = vmatprep.subr.mxu0 %v1995_v2  ;;  %v1612_v52 = vld [vmem:[%s2844_s9 + $0x10] sm:$0xff] }
 0x658   :  { %1392 = vrot.lane.b32.xlu0 %v1322_v53, %s2003_s6  ;;  %1972 = vmatpush3.msra.mxu0 %v1612_v52  ;;  %v1611_v53 = vld [vmem:[%s2844_s9 + $0x8] sm:$0xff] }
 0x659   :  { %1372 = vrot.lane.b32.xlu1 %v1317_v54, %s2957_s20  ;;  %v1314_v59 = vld [vmem:[#allocation6 + $0x12] sm:$0xff]  ;;  %1973 = vmatprep.subr.mxu0 %v1995_v2 }
 0x65a   :  { %v1309_v60 = vld [vmem:[#allocation6 + $0x11] sm:$0xff]  ;;  %1974 = vmatpush3.msra.mxu0 %v1611_v53 }
 0x65b   :  { %v1324_v61 = vld [vmem:[#allocation6 + $0x14] sm:$0xff]  ;;  %1975 = vmatprep.subr.mxu0 %v1995_v2 }
 0x65c   :  { %1354 = vrot.lane.b32.xlu0 %v1313_v55, %s2001_s1  ;;  %v1319_v62 = vld [vmem:[#allocation6 + $0x13] sm:$0xff] }
 0x65d   :  { %1334 = vrot.lane.b32.xlu1 %v1308_v56, %s1999_s2  ;;  %v1310_v63 = vld [vmem:[#allocation6 + $0x19] sm:$0xff]  ;;  %v1304_v27 = vld [vmem:[#allocation6 + $0x10] sm:$0xff] }
 0x65e   :  { %v1315_v0 = vld [vmem:[#allocation6 + $0x1a] sm:$0xff] }
 0x65f   :  { %v1320_v1 = vld [vmem:[#allocation6 + $0x1b] sm:$0xff] }
 0x660   :  { %1394 = vrot.lane.b32.xlu0 %v1323_v57, %s2003_s6  ;;  %v1325_v3 = vld [vmem:[#allocation6 + $0x1c] sm:$0xff] }
 0x661   :  { %1374 = vrot.lane.b32.xlu1 %v1318_v58, %s2957_s20  ;;  %v1311_v6 = vld [vmem:[#allocation6 + $0x21] sm:$0xf]  ;;  %v1305_v34 = vld [vmem:[#allocation6 + $0x18] sm:$0xff] }
 0x662   :  { %v1610_v57 = vld [vmem:[%s2844_s9] sm:$0xff] }
 0x663   :  { %1976 = vmatpush3.msra.mxu0 %v1610_v57 }
 0x664   :  { %1356 = vrot.lane.b32.xlu0 %v1314_v59, %s2001_s1 }
 0x665   :  { %1336 = vrot.lane.b32.xlu1 %v1309_v60, %s1999_s2 }
 0x668   :  { %1396 = vrot.lane.b32.xlu0 %v1324_v61, %s2003_s6 }
 0x669   :  { %1376 = vrot.lane.b32.xlu1 %v1319_v62, %s2957_s20  ;;  %v1326_v62 = vld [vmem:[#allocation6 + $0x24] sm:$0xf] }
 0x66c   :  { %1358 = vrot.lane.b32.xlu0 %v1315_v0, %s2001_s1 }
 0x66d   :  { %1338 = vrot.lane.b32.xlu1 %v1310_v63, %s1999_s2 }
 0x670   :  { %1398 = vrot.lane.b32.xlu0 %v1325_v3, %s2003_s6 }
 0x671   :  { %1378 = vrot.lane.b32.xlu1 %v1320_v1, %s2957_s20 }
 0x674   :  { %1360 = vrot.lane.b32.xlu0 %v1316_v5, %s2001_s1 }
 0x675   :  { %1380 = vrot.lane.b32.xlu1 %v1321_v4, %s2957_s20 }
 0x679   :  { %1340 = vrot.lane.b32.xlu1 %v1311_v6, %s1999_s2 }
 0x6c6   :  { %v1353_v7 = vpop.permute.xlu0 %1352 }
 0x6c7   :  { %v1333_v8 = vpop.permute.xlu1 %1332 }
 0x6c8   :  { %v1407_v10 = vsel %vm2958_vm3, %v1302_v9, %v1333_v8  ;;  %vm2969_vm3 = vmmov %vm2961_vm9 }
 0x6c9   :  { %v1412_v13 = vsel %vm366_vm11, %v1407_v10, %v1353_v7 }
 0x6ca   :  { %v1393_v11 = vpop.permute.xlu0 %1392 }
 0x6cb   :  { %v1373_v12 = vpop.permute.xlu1 %1372 }
 0x6cc   :  { %v1417_v14 = vsel %vm2959_vm1, %v1412_v13, %v1373_v12  ;;  %vm2970_vm1 = vmmov %vm2966_vm5 }
 0x6cd   :  { %v1422_v15 = vsel %vm2960_vm8, %v1417_v14, %v1393_v11  ;;  %vm2971_vm8 = vmmov %vm2963_vm12 }
 0x6ce   :  { %1951 = vmatmul.mubr.msk.f32.vlgmr.msra.gmra.mxu1 %vm2961_vm9, %v1422_v15  ;;  %v1355_v16 = vpop.permute.xlu0 %1354  ;;  %vm2972_vm9 = vmmov %vm2968_vm0 }
 0x6cf   :  { %v1335_v18 = vpop.permute.xlu1 %1334  ;;  %1953 = vmatprep.mubr.msk.f32.mxu1 %vm2917_vm14, %v1995_v2 }
 0x6d0   :  { %v1408_v19 = vsel %vm2962_vm10, %v1303_v17, %v1335_v18  ;;  %vm2973_vm10 = vmmov %vm2969_vm3 }
 0x6d1   :  { %v1413_v21 = vsel %vm366_vm11, %v1408_v19, %v1355_v16  ;;  %v1306_v16 = vld [vmem:[#allocation6 + $0x20] sm:$0xf] }
 0x6d2   :  { %v1395_v20 = vpop.permute.xlu0 %1394 }
 0x6d3   :  { %v1375_v22 = vpop.permute.xlu1 %1374 }
 0x6d4   :  { %v1418_v23 = vsel %vm2963_vm12, %v1413_v21, %v1375_v22  ;;  %vm2974_vm12 = vcmask 130054  }
 0x6d5   :  { %v1423_v24 = vsel %vm2964_vm2, %v1418_v23, %v1395_v20  ;;  %vm1565_vm2 = vcmask 128004  }
 0x6d6   :  { %1954 = vmatmul.mubr.msk.f32.gmra.mxu1 %vm2965_vm13, %v1423_v24  ;;  %v1357_v25 = vpop.permute.xlu0 %1356  ;;  %vm1567_vm13 = vcmask 125954  }
 0x6d7   :  { %v1337_v26 = vpop.permute.xlu1 %1336  ;;  %1956 = vmatprep.mubr.msk.f32.mxu1 %vm2917_vm14, %v1995_v2 }
 0x6d8   :  { %v1409_v28 = vsel %vm2966_vm5, %v1304_v27, %v1337_v26  ;;  %vm2975_vm5 = vmmov %vm2974_vm12 }
 0x6d9   :  { %v1414_v31 = vsel %vm366_vm11, %v1409_v28, %v1357_v25 }
 0x6da   :  { %v1397_v29 = vpop.permute.xlu0 %1396 }
 0x6db   :  { %v1377_v30 = vpop.permute.xlu1 %1376 }
 0x6dc   :  { %v1419_v32 = vsel %vm2967_vm15, %v1414_v31, %v1377_v30  ;;  %vm2976_vm15 = vmmov %vm2970_vm1 }
 0x6dd   :  { %v1424_v33 = vsel %vm2968_vm0, %v1419_v32, %v1397_v29 }
 0x6de   :  { %1957 = vmatmul.mubr.msk.f32.gmra.mxu1 %vm2969_vm3, %v1424_v33  ;;  %v1359_v36 = vpop.permute.xlu0 %1358 }
 0x6df   :  { %v1339_v35 = vpop.permute.xlu1 %1338  ;;  %1959 = vmatprep.mubr.msk.f32.mxu1 %vm2917_vm14, %v1995_v2 }
 0x6e0   :  { %v1410_v37 = vsel %vm2970_vm1, %v1305_v34, %v1339_v35  ;;  %vm2978_vm1 = vmmov %vm2968_vm0 }
 0x6e1   :  { %v1415_v38 = vsel %vm366_vm11, %v1410_v37, %v1359_v36 }
 0x6e2   :  { %v1399_v40 = vpop.permute.xlu0 %1398 }
 0x6e3   :  { %v1379_v39 = vpop.permute.xlu1 %1378 }
 0x6e4   :  { %v1420_v41 = vsel %vm2971_vm8, %v1415_v38, %v1379_v39  ;;  %v33_v38 = vstv %s2847_s17 }
 0x6e5   :  { %v1425_v42 = vsel %vm2972_vm9, %v1420_v41, %v1399_v40  ;;  %vm2980_vm9 = vmmov %vm2968_vm0  ;;  %34 = vst [vmem:[#allocation9] sm:$0x1] %v33_v38 }
 0x6e6   :  { %1960 = vmatmul.mubr.msk.f32.gmra.mxu1 %vm2973_vm10, %v1425_v42  ;;  %v1361_v18 = vpop.permute.xlu0 %1360 }
 0x6e7   :  { %1962 = vmatprep.mubr.msk.f32.mxu1 %vm2917_vm14, %v1995_v2  ;;  %v1381_v14 = vpop.permute.xlu1 %1380 }
 0x6eb   :  { %v1341_v15 = vpop.permute.xlu1 %1340 }
 0x6ec   :  { %v1411_v17 = vsel %vm2976_vm15, %v1306_v16, %v1341_v15  ;;  %v1786_v42 = vld [vmem:[#allocation9] ss:$0 sm:$0xff] }
 0x6ed   :  { %v1416_v20 = vsel %vm366_vm11, %v1411_v17, %v1361_v18 }
 0x78e   :  { %v1520_v45 = vpop.f32.mrf.mxu1 }
 0x78f   :  { %v1521_v46 = vadd.f32 %v2733_v44, %v1520_v45 }
 0x790   :  { %v1952_v47 = vpop.f32.mrf.mxu1 }
 0x791   :  { %v1544_v50 = vmul.f32 0.1, %v1521_v46 }
 0x793   :  { %v1549_v51 = vmax.f32 %v1521_v46, %v1544_v50 }
 0x795   :  { %1554 = vst.msk [vmem:[%s2846_s24] sm:$0xff] %vm366_vm11, %v1549_v51 }
 0x796   :  { %1563 = vst.msk [vmem:[#allocation7 + $0x1] sm:$0x3] %vm714_vm4, %v1549_v51  ;;  %v1525_v54 = vpop.f32.mrf.mxu1 }
 0x797   :  { %1564 = vst.msk [vmem:[#allocation7 - $0x1] sm:$0xc0] %vm2974_vm12, %v1549_v51  ;;  %v1526_v55 = vadd.f32 %v2733_v44, %v1525_v54 }
 0x798   :  { %v1955_v56 = vpop.f32.mrf.mxu1 }
 0x799   :  { %v1545_v58 = vmul.f32 0.1, %v1526_v55 }
 0x79b   :  { %v1550_v59 = vmax.f32 %v1526_v55, %v1545_v58 }
 0x79d   :  { %1555 = vst.msk [vmem:[%s2846_s24 + $0x8] sm:$0xff] %vm366_vm11, %v1550_v59 }
 0x79e   :  { %v1574_v60 = vld [vmem:[#allocation7 + $0x1] sm:$0xff]  ;;  %1566 = vst.msk [vmem:[#allocation7 + $0x5] sm:$0x30] %vm1565_vm2, %v1550_v59  ;;  %v1530_v61 = vpop.f32.mrf.mxu1 }
 0x79f   :  { %1583 = vrot.lane.b32.xlu1 %v1574_v60, %s2001_s1  ;;  %v1531_v63 = vadd.f32 %v2733_v44, %v1530_v61  ;;  %v1571_v24 = vld [vmem:[#allocation7] sm:$0xff] }
 0x7a0   :  { %v1958_v0 = vpop.f32.mrf.mxu1 }
 0x7a1   :  { %v1546_v1 = vmul.f32 0.1, %v1531_v63 }
 0x7a3   :  { %1400 = vrot.lane.b32.xlu1 %v1326_v62, %s2003_s6  ;;  %v1551_v3 = vmax.f32 %v1531_v63, %v1546_v1 }
 0x7a5   :  { %v1577_v4 = vld [vmem:[#allocation7 + $0x2] sm:$0xff]  ;;  %1556 = vst.msk [vmem:[%s2846_s24 + $0x10] sm:$0xff] %vm366_vm11, %v1551_v3 }
 0x7a6   :  { %1568 = vst.msk [vmem:[#allocation7 + $0xb] sm:$0xc] %vm1567_vm13, %v1551_v3  ;;  %1595 = vrot.lane.b32.xlu0 %v1577_v4, %s2003_s6  ;;  %v1535_v5 = vpop.f32.mrf.mxu1 }
 0x7a7   :  { %v1536_v6 = vadd.f32 %v2733_v44, %v1535_v5 }
 0x7a8   :  { %v1961_v7 = vpop.f32.mrf.mxu1 }
 0x7a9   :  { %v1547_v8 = vmul.f32 0.1, %v1536_v6 }
 0x7ab   :  { %v1552_v9 = vmax.f32 %v1536_v6, %v1547_v8 }
 0x7ad   :  { %v1575_v10 = vld [vmem:[#allocation7 + $0x9] sm:$0xff]  ;;  %1557 = vst.msk [vmem:[%s2846_s24 + $0x18] sm:$0xff] %vm366_vm11, %v1552_v9 }
 0x7ae   :  { %1569 = vst.msk [vmem:[#allocation7 + $0x11] sm:$0x3] %vm714_vm4, %v1552_v9  ;;  %1585 = vrot.lane.b32.xlu0 %v1575_v10, %s2001_s1  ;;  %vm2977_vm4 = vmmov %vm2971_vm8  ;;  %v1572_v29 = vld [vmem:[#allocation7 + $0x8] sm:$0xff] }
 0x7af   :  { %1570 = vst.msk [vmem:[#allocation7 + $0xf] sm:$0xc0] %vm2975_vm5, %v1552_v9  ;;  %v1421_v22 = vsel %vm2977_vm4, %v1416_v20, %v1381_v14  ;;  %vm2979_vm8 = vmmov %vm2968_vm0 }
 0x7b5   :  { %v1578_v11 = vld [vmem:[#allocation7 + $0xa] sm:$0xff] }
 0x7b6   :  { %v1576_v12 = vld [vmem:[#allocation7 + $0x11] sm:$0xff]  ;;  %1597 = vrot.lane.b32.xlu0 %v1578_v11, %s2003_s6 }
 0x7b7   :  { %1587 = vrot.lane.b32.xlu1 %v1576_v12, %s2001_s1  ;;  %v1579_v13 = vld [vmem:[#allocation7 + $0x12] sm:$0xff] }
 0x7b8   :  { %v1573_v34 = vld [vmem:[#allocation7 + $0x10] sm:$0xff] }
 0x7ba   :  { %1599 = vrot.lane.b32.xlu0 %v1579_v13, %s2003_s6 }
 0x811   :  { %v1584_v19 = vpop.permute.xlu1 %1583 }
 0x812   :  { %v1604_v25 = vsel %vm366_vm11, %v1571_v24, %v1584_v19 }
 0x815   :  { %v1401_v21 = vpop.permute.xlu1 %1400 }
 0x816   :  { %v1426_v23 = vsel %vm2968_vm0, %v1421_v22, %v1401_v21 }
 0x817   :  { %1963 = vmatmul.mubr.msk.f32.gmra.mxu1 %vm2969_vm3, %v1426_v23 }
 0x818   :  { %v1596_v26 = vpop.permute.xlu0 %1595 }
 0x819   :  { %v1607_v27 = vsel %vm2978_vm1, %v1604_v25, %v1596_v26 }
 0x81a   :  { %1978 = vmatmul.mubr.msk.f32.vlgmr.msra.gmra.mxu0 %vm774_vm7, %v1607_v27 }
 0x81b   :  { %1980 = vmatprep.mubr.msk.f32.mxu0 %vm2917_vm14, %v1995_v2 }
 0x820   :  { %v1586_v28 = vpop.permute.xlu0 %1585 }
 0x821   :  { %v1605_v30 = vsel %vm366_vm11, %v1572_v29, %v1586_v28 }
 0x828   :  { %v1598_v31 = vpop.permute.xlu0 %1597 }
 0x829   :  { %v1608_v32 = vsel %vm2979_vm8, %v1605_v30, %v1598_v31  ;;  %v1588_v33 = vpop.permute.xlu1 %1587 }
 0x82a   :  { %1981 = vmatmul.mubr.msk.f32.gmra.mxu0 %vm774_vm7, %v1608_v32  ;;  %v1606_v35 = vsel %vm366_vm11, %v1573_v34, %v1588_v33  ;;  %vm2981_vm11 = vcmask 125952  }
 0x82b   :  { %1983 = vmatprep.mubr.msk.f32.mxu0 %vm2917_vm14, %v1995_v2 }
 0x82c   :  { %v1600_v36 = vpop.permute.xlu0 %1599 }
 0x82d   :  { %v1609_v37 = vsel %vm2980_vm9, %v1606_v35, %v1600_v36 }
 0x82e   :  { %1984 = vmatmul.mubr.msk.f32.gmra.mxu0 %vm774_vm7, %v1609_v37 }
 0x8d7   :  { %v1540_v39 = vpop.f32.mrf.mxu1 }
 0x8d8   :  { %v1541_v40 = vadd.f32 %v2733_v44, %v1540_v39 }
 0x8d9   :  { %v1964_v41 = vpop.f32.mrf.mxu1 }
 0x8da   :  { %v1548_v43 = vmul.f32 0.1, %v1541_v40  ;;  %v1698_v45 = vpop.f32.mrf.mxu0 }
 0x8db   :  { %v1699_v46 = vadd.f32 %v1786_v42, %v1698_v45 }
 0x8dc   :  { %v1553_v2 = vmax.f32 %v1541_v40, %v1548_v43  ;;  %v1979_v47 = vpop.f32.mrf.mxu0 }
 0x8dd   :  { %1712 = vst.msk [vmem:[%s2848_s25] sm:$0xff] %vm101_vm6, %v1699_v46 }
 0x8de   :  { %1558 = vst.msk [vmem:[%s2846_s24 + $0x20] sm:$0xf] %vm2981_vm11, %v1553_v2 }
 0x8ea   :  { %v1703_v48 = vpop.f32.mrf.mxu0 }
 0x8eb   :  { %v1704_v49 = vadd.f32 %v1786_v42, %v1703_v48 }
 0x8ec   :  { %v1982_v44 = vpop.f32.mrf.mxu0 }
 0x8ed   :  { %1713 = vst.msk [vmem:[%s2848_s25 + $0x8] sm:$0xff] %vm101_vm6, %v1704_v49 }
 0x8ee   :  { %v1708_v50 = vpop.f32.mrf.mxu0 }
 0x8ef   :  { %v1709_v51 = vadd.f32 %v1786_v42, %v1708_v50 }
 0x8f0   :  { %v1985_v52 = vpop.f32.mrf.mxu0 }
 0x8f1   :  { %1714 = vst.msk [vmem:[%s2848_s25 + $0x10] sm:$0xff] %vm101_vm6, %v1709_v51 }

</bundles_post_ra>
